<compile_context>
chip_gen: v7x
topology: tpu7x:2x2x1
jax: 0.10.0
libtpu: 0.0.40
codegen_flags: <defaults>
</compile_context>

<pallas_src>
import numpy as np

import jax
import jax.numpy as jnp
from jax.experimental import pallas as pl
from jax.experimental.pallas import tpu as pltpu

_CH = (1, 8, 16, 32, 64)          # channels: input, conv1..conv4 outputs


def _round_up(v, m):
    return (v + m - 1) // m * m


def _geometry(h0, w0):
    """Static per-conv-stage geometry of the flat padded layout."""
    stages = []
    h, w = h0, w0
    for _ in range(4):
        hp, wp = h + 2, w + 2
        L = hp * wp                       # valid flat length (incl. zero border)
        margin = wp + 1                   # extra zero lanes on each side
        buf = _round_up(L + 2 * margin, 128)   # 128-aligned buffer lane width
        stages.append(dict(h=h, w=w, hp=hp, wp=wp, L=L, margin=margin, buf=buf))
        h //= 2
        w //= 2
    return stages


# --------------------------------------------------------------------------- #
# constant helper matrices (per-sample, batch independent)                     #
# --------------------------------------------------------------------------- #

def _pool_select_matrix(g_cur, g_nxt):
    """0/1 matrix scattering the stride-2 window maxima of the current stage's
    conv output into the next stage's zero-padded, margin-extended buffer.
    Rows at non-anchor (garbage) lanes are all-zero; columns at margin/padding
    lanes are never written, so the next buffer's zero padding is exact."""
    wp, L = g_cur["wp"], g_cur["L"]
    lm = L - wp - 1                        # rows of the 4-way shifted-max array
    h2, w2 = g_cur["h"] // 2, g_cur["w"] // 2
    wp2, m2 = g_nxt["wp"], g_nxt["margin"]
    s = np.zeros((lm, g_nxt["buf"]), np.float32)
    for ph in range(h2):
        for pw in range(w2):
            p = (2 * ph + 1) * wp + (2 * pw + 1)       # window anchor (current)
            q = m2 + (ph + 1) * wp2 + (pw + 1)         # destination (next buf)
            s[p, q] = 1.0
    return s


def _avgpool_mask(g):
    """(1, L) mask: 1/(h*w) at interior positions of the padded flat layout."""
    a = np.zeros((1, g["L"]), np.float32)
    for hh in range(1, g["h"] + 1):
        for ww in range(1, g["w"] + 1):
            a[0, hh * g["wp"] + ww] = 1.0 / float(g["h"] * g["w"])
    return a


# --------------------------------------------------------------------------- #
# the fused Pallas kernel (one grid step == one sample)                        #
# --------------------------------------------------------------------------- #

def _build_kernel(geom):
    g1, g2, g3, g4 = geom

    def conv_relu(buf, w_ref, b_ref, tap_ref, g):
        # buf: (cin, g.buf) value, exact zeros outside the valid data.
        # tap_ref: (9*cin, g.L) VMEM scratch; w_ref: (cout, 9*cin); b: (cout, 1)
        wp, L, margin = g["wp"], g["L"], g["margin"]
        cin = tap_ref.shape[0] // 9
        for k in range(9):
            dh, dw = divmod(k, 3)
            off = (dh - 1) * wp + (dw - 1)
            tap_ref[k * cin:(k + 1) * cin, :] = \
                buf[:, margin + off: margin + off + L]
        y = jnp.dot(w_ref[...], tap_ref[...],
                    preferred_element_type=jnp.float32)        # (cout, L)
        return jnp.maximum(y + b_ref[...], 0.0)

    def pool_select(y, s_ref, g):
        # 2x2 stride-2 max-pool of the interior of y, scattered into the next
        # stage's zero-padded buffer via one 0/1 matmul.
        wp, L = g["wp"], g["L"]
        lm = L - wp - 1
        m = jnp.maximum(jnp.maximum(y[:, 0:lm], y[:, 1:1 + lm]),
                        jnp.maximum(y[:, wp:wp + lm], y[:, wp + 1:wp + 1 + lm]))
        return jnp.dot(m, s_ref[...],
                       preferred_element_type=jnp.float32)     # (cout, next buf)

    def kernel(x_ref, w1, b1, w2, b2, w3, b3, w4, b4, s1, s2, s3,
               head_ref, wle_ref, ext_ref, bl_ref, o_ref,
               tap1, tap2, tap3, tap4):
        buf = x_ref[0]                                          # (1, buf1)
        buf = pool_select(conv_relu(buf, w1, b1, tap1, g1), s1, g1)
        buf = pool_select(conv_relu(buf, w2, b2, tap2, g2), s2, g2)
        buf = pool_select(conv_relu(buf, w3, b3, tap3, g3), s3, g3)
        y4 = conv_relu(buf, w4, b4, tap4, g4)                   # (64, L4)

        # adaptive avg-pool + conv half of the linear head, folded into one
        # (64, L4) constant:  logit_conv = sum(y4 * head).
        t = jnp.sum(y4 * head_ref[...], axis=1, keepdims=True)  # (64, 1)
        logit = jnp.sum(t, axis=0, keepdims=True)                # (1, 1)
        logit = logit + jnp.sum(wle_ref[...] * ext_ref[0],
                                axis=1, keepdims=True)           # ext features
        logit = logit + bl_ref[...]
        o_ref[0] = pl.reciprocal(1.0 + jnp.exp(-logit), approx=False)

    return kernel


# --------------------------------------------------------------------------- #
# wrapper                                                                      #
# --------------------------------------------------------------------------- #

@jax.jit
def classifier_forward(params, x_nchw, ext):
    x = x_nchw.astype(jnp.float32)
    n, cin, h, w = x.shape
    assert cin == 1 and h % 8 == 0 and w % 8 == 0, (n, cin, h, w)
    geom = _geometry(h, w)
    g1, g4 = geom[0], geom[3]

    # Input layout prep (zero-pad + flatten + margins).  O(input) and fused by
    # XLA into the surrounding program; ~3 KB here.
    xpad = jnp.pad(x, ((0, 0), (0, 0), (1, 1), (1, 1)))          # (n,1,hp,wp)
    xflat = xpad.reshape(n, 1, g1["L"])
    xbuf = jnp.pad(xflat, ((0, 0), (0, 0),
                           (g1["margin"], g1["buf"] - g1["L"] - g1["margin"])))

    # Weights HWIO (3,3,ci,co) -> (co, 9*ci); column index = (kh*3+kw)*ci + c
    # to match the tap scratch's sublane layout.
    def prep_w(w_hwio):
        kh, kw, ci, co = w_hwio.shape
        return jnp.transpose(w_hwio, (3, 0, 1, 2)).reshape(co, kh * kw * ci)

    ws = [prep_w(params[f"w{i}"]).astype(jnp.float32) for i in range(1, 5)]
    bs = [params[f"b{i}"].reshape(-1, 1).astype(jnp.float32) for i in range(1, 5)]

    # Per-sample (batch-independent) pool-select matrices.
    sel = [jnp.asarray(_pool_select_matrix(geom[i], geom[i + 1]), jnp.float32)
           for i in range(3)]

    # Avg-pool folded into the conv half of the linear head: (64, L4).
    wl = params["wl"].astype(jnp.float32)                        # (67, 1)
    head = wl[:64] * jnp.asarray(_avgpool_mask(g4), jnp.float32)  # (64, L4)
    wle = wl[64:].T                                              # (1, 3)
    bias = params["bl"].reshape(1, 1).astype(jnp.float32)
    ext3 = ext.astype(jnp.float32).reshape(n, 1, 3)

    inputs = [xbuf, ws[0], bs[0], ws[1], bs[1], ws[2], bs[2], ws[3], bs[3],
              sel[0], sel[1], sel[2], head, wle, ext3, bias]

    def resident(a):  # whole (2-D) array, same block every grid step
        assert a.ndim == 2
        return pl.BlockSpec(a.shape, lambda i: (0, 0))

    in_specs = ([pl.BlockSpec((1, 1, g1["buf"]), lambda i: (i, 0, 0))]
                + [resident(a) for a in inputs[1:14]]
                + [pl.BlockSpec((1, 1, 3), lambda i: (i, 0, 0)),
                   resident(bias)])

    grid_spec = pltpu.PrefetchScalarGridSpec(
        num_scalar_prefetch=0,
        grid=(n,),
        in_specs=in_specs,
        out_specs=pl.BlockSpec((1, 1, 1), lambda i: (i, 0, 0)),
        scratch_shapes=[pltpu.VMEM((9 * _CH[j], geom[j]["L"]), jnp.float32)
                        for j in range(4)],
    )

    out = pl.pallas_call(
        _build_kernel(geom),
        out_shape=jax.ShapeDtypeStruct((n, 1, 1), jnp.float32),
        grid_spec=grid_spec,
        compiler_params=pltpu.CompilerParams(
            dimension_semantics=("parallel",),
            vmem_limit_bytes=32 * 1024 * 1024),
    )(*inputs)
    return out.reshape(n, 1)


# ------------------------- reference & params ------------------------------ #

def reference_forward(params, x_nchw, ext):
    x = x_nchw.astype(jnp.float32)
    hi = jax.lax.Precision.HIGHEST

    def conv(x, w_hwio, b):
        y = jax.lax.conv_general_dilated(
            x, w_hwio, window_strides=(1, 1), padding="SAME",
            dimension_numbers=("NCHW", "HWIO", "NCHW"), precision=hi)
        return jax.nn.relu(y + b.reshape(1, -1, 1, 1))

    def pool(x):
        return jax.lax.reduce_window(x, -jnp.inf, jax.lax.max,
                                     (1, 1, 2, 2), (1, 1, 2, 2), "VALID")

    x = pool(conv(x, params["w1"], params["b1"]))
    x = pool(conv(x, params["w2"], params["b2"]))
    x = pool(conv(x, params["w3"], params["b3"]))
    x = conv(x, params["w4"], params["b4"])
    pooled = jnp.mean(x, axis=(2, 3))                               # (N, 64)
    cat = jnp.concatenate([pooled, ext.astype(jnp.float32)], axis=1)  # (N, 67)
    logit = jnp.dot(cat, params["wl"], precision=hi) + params["bl"]
    return jax.nn.sigmoid(logit)


def init_params(key):
    ks = jax.random.split(key, 10)

    def w(k, shape, fan_in):
        return jax.random.normal(k, shape, jnp.float32) / jnp.sqrt(float(fan_in))

    return {
        "w1": w(ks[0], (3, 3, 1, 8), 9 * 1),    "b1": w(ks[1], (8,), 9 * 1),
        "w2": w(ks[2], (3, 3, 8, 16), 9 * 8),   "b2": w(ks[3], (16,), 9 * 8),
        "w3": w(ks[4], (3, 3, 16, 32), 9 * 16), "b3": w(ks[5], (32,), 9 * 16),
        "w4": w(ks[6], (3, 3, 32, 64), 9 * 32), "b4": w(ks[7], (64,), 9 * 32),
        "wl": w(ks[8], (67, 1), 67),            "bl": w(ks[9], (1,), 67),
    }


if __name__ == "__main__":
    key = jax.random.PRNGKey(0)
    kx, ke, kp = jax.random.split(key, 3)
    x = jax.random.normal(kx, (2, 1, 16, 16), jnp.float32)   # NCHW like PyTorch
    ext = jax.random.normal(ke, (2, 3), jnp.float32)         # 67 - 64 = 3 extras
    params = init_params(kp)

    y = classifier_forward(params, x, ext)
    y = jax.block_until_ready(y)

    y_ref = reference_forward(params, x, ext)
    assert y.shape == (2, 1), y.shape
    # f32 end-to-end (all dots accumulate in f32 on the MXU; the 0/1 select
    # matrices are exact), so the tight tolerance from v1 is kept.
    assert jnp.allclose(y, y_ref, atol=2e-4, rtol=2e-4), (y, y_ref)
    print("KERNEL_OK")
</pallas_src>

<mosaic_0001>
module attributes {stable_mosaic.version = 11 : i64} {
  func.func @kernel(%arg0: i32, %arg1: memref<1x1x384xf32, #tpu.memory_space<vmem>>, %arg2: memref<8x9xf32, #tpu.memory_space<vmem>>, %arg3: memref<8x1xf32, #tpu.memory_space<vmem>>, %arg4: memref<16x72xf32, #tpu.memory_space<vmem>>, %arg5: memref<16x1xf32, #tpu.memory_space<vmem>>, %arg6: memref<32x144xf32, #tpu.memory_space<vmem>>, %arg7: memref<32x1xf32, #tpu.memory_space<vmem>>, %arg8: memref<64x288xf32, #tpu.memory_space<vmem>>, %arg9: memref<64x1xf32, #tpu.memory_space<vmem>>, %arg10: memref<305x128xf32, #tpu.memory_space<vmem>>, %arg11: memref<89x128xf32, #tpu.memory_space<vmem>>, %arg12: memref<29x128xf32, #tpu.memory_space<vmem>>, %arg13: memref<64x16xf32, #tpu.memory_space<vmem>>, %arg14: memref<1x3xf32, #tpu.memory_space<vmem>>, %arg15: memref<1x1x3xf32, #tpu.memory_space<vmem>>, %arg16: memref<1x1xf32, #tpu.memory_space<vmem>>, %arg17: memref<1x1x1xf32, #tpu.memory_space<vmem>>, %arg18: memref<9x324xf32, #tpu.memory_space<vmem>>, %arg19: memref<72x100xf32, #tpu.memory_space<vmem>>, %arg20: memref<144x36xf32, #tpu.memory_space<vmem>>, %arg21: memref<288x16xf32, #tpu.memory_space<vmem>>) attributes {dimension_semantics = [#tpu.dimension_semantics<parallel>], iteration_bounds = array<i64: 2>, scalar_prefetch = 0 : i64, scratch_operands = 4 : i64, tpu.core_type = #tpu.core_type<tc>, window_params = [{transform_indices = @transform_0, window_bounds = array<i64: 1, 1, 384>}, {pipeline_mode = #tpu.pipeline_mode<synchronous>, transform_indices = @transform_1, window_bounds = array<i64: 8, 9>}, {pipeline_mode = #tpu.pipeline_mode<synchronous>, transform_indices = @transform_2, window_bounds = array<i64: 8, 1>}, {pipeline_mode = #tpu.pipeline_mode<synchronous>, transform_indices = @transform_3, window_bounds = array<i64: 16, 72>}, {pipeline_mode = #tpu.pipeline_mode<synchronous>, transform_indices = @transform_4, window_bounds = array<i64: 16, 1>}, {pipeline_mode = #tpu.pipeline_mode<synchronous>, transform_indices = @transform_5, window_bounds = array<i64: 32, 144>}, {pipeline_mode = #tpu.pipeline_mode<synchronous>, transform_indices = @transform_6, window_bounds = array<i64: 32, 1>}, {pipeline_mode = #tpu.pipeline_mode<synchronous>, transform_indices = @transform_7, window_bounds = array<i64: 64, 288>}, {pipeline_mode = #tpu.pipeline_mode<synchronous>, transform_indices = @transform_8, window_bounds = array<i64: 64, 1>}, {pipeline_mode = #tpu.pipeline_mode<synchronous>, transform_indices = @transform_9, window_bounds = array<i64: 305, 128>}, {pipeline_mode = #tpu.pipeline_mode<synchronous>, transform_indices = @transform_10, window_bounds = array<i64: 89, 128>}, {pipeline_mode = #tpu.pipeline_mode<synchronous>, transform_indices = @transform_11, window_bounds = array<i64: 29, 128>}, {pipeline_mode = #tpu.pipeline_mode<synchronous>, transform_indices = @transform_12, window_bounds = array<i64: 64, 16>}, {pipeline_mode = #tpu.pipeline_mode<synchronous>, transform_indices = @transform_13, window_bounds = array<i64: 1, 3>}, {transform_indices = @transform_14, window_bounds = array<i64: 1, 1, 3>}, {pipeline_mode = #tpu.pipeline_mode<synchronous>, transform_indices = @transform_15, window_bounds = array<i64: 1, 1>}, {transform_indices = @transform_16, window_bounds = array<i64: 1, 1, 1>}]} {
    %c0 = arith.constant 0 : index
    %c0_0 = arith.constant 0 : index
    %c0_1 = arith.constant 0 : index
    %0 = vector.load %arg1[%c0, %c0_0, %c0_1] : memref<1x1x384xf32, #tpu.memory_space<vmem>>, vector<1x1x384xf32>
    %1 = vector.shape_cast %0 : vector<1x1x384xf32> to vector<1x384xf32>
    %2 = vector.extract_strided_slice %1 {offsets = [0, 0], sizes = [1, 324], strides = [1, 1]} : vector<1x384xf32> to vector<1x324xf32>
    %c0_2 = arith.constant 0 : index
    %c0_3 = arith.constant 0 : index
    %3 = vector.load %arg18[%c0_2, %c0_3] : memref<9x324xf32, #tpu.memory_space<vmem>>, vector<1x324xf32>
    tpu.vector_store %arg18[%c0_2, %c0_3], %2 {strides = array<i32>} : memref<9x324xf32, #tpu.memory_space<vmem>>, vector<1x324xf32>,
    %4 = vector.extract_strided_slice %1 {offsets = [0, 1], sizes = [1, 324], strides = [1, 1]} : vector<1x384xf32> to vector<1x324xf32>
    %c1 = arith.constant 1 : index
    %c0_4 = arith.constant 0 : index
    %5 = vector.load %arg18[%c1, %c0_4] : memref<9x324xf32, #tpu.memory_space<vmem>>, vector<1x324xf32>
    tpu.vector_store %arg18[%c1, %c0_4], %4 {strides = array<i32>} : memref<9x324xf32, #tpu.memory_space<vmem>>, vector<1x324xf32>,
    %6 = vector.extract_strided_slice %1 {offsets = [0, 2], sizes = [1, 324], strides = [1, 1]} : vector<1x384xf32> to vector<1x324xf32>
    %c2 = arith.constant 2 : index
    %c0_5 = arith.constant 0 : index
    %7 = vector.load %arg18[%c2, %c0_5] : memref<9x324xf32, #tpu.memory_space<vmem>>, vector<1x324xf32>
    tpu.vector_store %arg18[%c2, %c0_5], %6 {strides = array<i32>} : memref<9x324xf32, #tpu.memory_space<vmem>>, vector<1x324xf32>,
    %8 = vector.extract_strided_slice %1 {offsets = [0, 18], sizes = [1, 324], strides = [1, 1]} : vector<1x384xf32> to vector<1x324xf32>
    %c3 = arith.constant 3 : index
    %c0_6 = arith.constant 0 : index
    %9 = vector.load %arg18[%c3, %c0_6] : memref<9x324xf32, #tpu.memory_space<vmem>>, vector<1x324xf32>
    tpu.vector_store %arg18[%c3, %c0_6], %8 {strides = array<i32>} : memref<9x324xf32, #tpu.memory_space<vmem>>, vector<1x324xf32>,
    %10 = vector.extract_strided_slice %1 {offsets = [0, 19], sizes = [1, 324], strides = [1, 1]} : vector<1x384xf32> to vector<1x324xf32>
    %c4 = arith.constant 4 : index
    %c0_7 = arith.constant 0 : index
    %11 = vector.load %arg18[%c4, %c0_7] : memref<9x324xf32, #tpu.memory_space<vmem>>, vector<1x324xf32>
    tpu.vector_store %arg18[%c4, %c0_7], %10 {strides = array<i32>} : memref<9x324xf32, #tpu.memory_space<vmem>>, vector<1x324xf32>,
    %12 = vector.extract_strided_slice %1 {offsets = [0, 20], sizes = [1, 324], strides = [1, 1]} : vector<1x384xf32> to vector<1x324xf32>
    %c5 = arith.constant 5 : index
    %c0_8 = arith.constant 0 : index
    %13 = vector.load %arg18[%c5, %c0_8] : memref<9x324xf32, #tpu.memory_space<vmem>>, vector<1x324xf32>
    tpu.vector_store %arg18[%c5, %c0_8], %12 {strides = array<i32>} : memref<9x324xf32, #tpu.memory_space<vmem>>, vector<1x324xf32>,
    %14 = vector.extract_strided_slice %1 {offsets = [0, 36], sizes = [1, 324], strides = [1, 1]} : vector<1x384xf32> to vector<1x324xf32>
    %c6 = arith.constant 6 : index
    %c0_9 = arith.constant 0 : index
    %15 = vector.load %arg18[%c6, %c0_9] : memref<9x324xf32, #tpu.memory_space<vmem>>, vector<1x324xf32>
    tpu.vector_store %arg18[%c6, %c0_9], %14 {strides = array<i32>} : memref<9x324xf32, #tpu.memory_space<vmem>>, vector<1x324xf32>,
    %16 = vector.extract_strided_slice %1 {offsets = [0, 37], sizes = [1, 324], strides = [1, 1]} : vector<1x384xf32> to vector<1x324xf32>
    %c7 = arith.constant 7 : index
    %c0_10 = arith.constant 0 : index
    %17 = vector.load %arg18[%c7, %c0_10] : memref<9x324xf32, #tpu.memory_space<vmem>>, vector<1x324xf32>
    tpu.vector_store %arg18[%c7, %c0_10], %16 {strides = array<i32>} : memref<9x324xf32, #tpu.memory_space<vmem>>, vector<1x324xf32>,
    %18 = vector.extract_strided_slice %1 {offsets = [0, 38], sizes = [1, 324], strides = [1, 1]} : vector<1x384xf32> to vector<1x324xf32>
    %c8 = arith.constant 8 : index
    %c0_11 = arith.constant 0 : index
    %19 = vector.load %arg18[%c8, %c0_11] : memref<9x324xf32, #tpu.memory_space<vmem>>, vector<1x324xf32>
    tpu.vector_store %arg18[%c8, %c0_11], %18 {strides = array<i32>} : memref<9x324xf32, #tpu.memory_space<vmem>>, vector<1x324xf32>,
    %c0_12 = arith.constant 0 : index
    %c0_13 = arith.constant 0 : index
    %20 = vector.load %arg2[%c0_12, %c0_13] : memref<8x9xf32, #tpu.memory_space<vmem>>, vector<8x9xf32>
    %c0_14 = arith.constant 0 : index
    %c0_15 = arith.constant 0 : index
    %21 = vector.load %arg18[%c0_14, %c0_15] : memref<9x324xf32, #tpu.memory_space<vmem>>, vector<9x324xf32>
    %cst = arith.constant dense<0.000000e+00> : vector<8x324xf32>
    %22 = tpu.matmul %20, %21, %cst {dimension_numbers = #tpu.dot_dimension_numbers<[1], [0], [0], [1], [0, 0, 1, 1], [], []>} : vector<8x9xf32>, vector<9x324xf32>, vector<8x324xf32> -> vector<8x324xf32>
    %c0_16 = arith.constant 0 : index
    %c0_17 = arith.constant 0 : index
    %23 = vector.load %arg3[%c0_16, %c0_17] : memref<8x1xf32, #tpu.memory_space<vmem>>, vector<8x1xf32>
    %24 = vector.broadcast %23 : vector<8x1xf32> to vector<8x324xf32>
    %25 = arith.addf %22, %24 : vector<8x324xf32>
    %cst_18 = arith.constant 0.000000e+00 : f32
    %26 = vector.broadcast %cst_18 : f32 to vector<8x324xf32>
    %27 = arith.maximumf %25, %26 : vector<8x324xf32>
    %28 = vector.extract_strided_slice %27 {offsets = [0, 0], sizes = [8, 305], strides = [1, 1]} : vector<8x324xf32> to vector<8x305xf32>
    %29 = vector.extract_strided_slice %27 {offsets = [0, 1], sizes = [8, 305], strides = [1, 1]} : vector<8x324xf32> to vector<8x305xf32>
    %30 = arith.maximumf %28, %29 : vector<8x305xf32>
    %31 = vector.extract_strided_slice %27 {offsets = [0, 18], sizes = [8, 305], strides = [1, 1]} : vector<8x324xf32> to vector<8x305xf32>
    %32 = vector.extract_strided_slice %27 {offsets = [0, 19], sizes = [8, 305], strides = [1, 1]} : vector<8x324xf32> to vector<8x305xf32>
    %33 = arith.maximumf %31, %32 : vector<8x305xf32>
    %34 = arith.maximumf %30, %33 : vector<8x305xf32>
    %c0_19 = arith.constant 0 : index
    %c0_20 = arith.constant 0 : index
    %35 = vector.load %arg10[%c0_19, %c0_20] : memref<305x128xf32, #tpu.memory_space<vmem>>, vector<305x128xf32>
    %cst_21 = arith.constant dense<0.000000e+00> : vector<8x128xf32>
    %36 = tpu.matmul %34, %35, %cst_21 {dimension_numbers = #tpu.dot_dimension_numbers<[1], [0], [0], [1], [0, 0, 1, 1], [], []>} : vector<8x305xf32>, vector<305x128xf32>, vector<8x128xf32> -> vector<8x128xf32>
    %37 = vector.extract_strided_slice %36 {offsets = [0, 0], sizes = [8, 100], strides = [1, 1]} : vector<8x128xf32> to vector<8x100xf32>
    %c0_22 = arith.constant 0 : index
    %c0_23 = arith.constant 0 : index
    %38 = vector.load %arg19[%c0_22, %c0_23] : memref<72x100xf32, #tpu.memory_space<vmem>>, vector<8x100xf32>
    tpu.vector_store %arg19[%c0_22, %c0_23], %37 {strides = array<i32>} : memref<72x100xf32, #tpu.memory_space<vmem>>, vector<8x100xf32>,
    %39 = vector.extract_strided_slice %36 {offsets = [0, 1], sizes = [8, 100], strides = [1, 1]} : vector<8x128xf32> to vector<8x100xf32>
    %c8_24 = arith.constant 8 : index
    %c0_25 = arith.constant 0 : index
    %40 = vector.load %arg19[%c8_24, %c0_25] : memref<72x100xf32, #tpu.memory_space<vmem>>, vector<8x100xf32>
    tpu.vector_store %arg19[%c8_24, %c0_25], %39 {strides = array<i32>} : memref<72x100xf32, #tpu.memory_space<vmem>>, vector<8x100xf32>,
    %41 = vector.extract_strided_slice %36 {offsets = [0, 2], sizes = [8, 100], strides = [1, 1]} : vector<8x128xf32> to vector<8x100xf32>
    %c16 = arith.constant 16 : index
    %c0_26 = arith.constant 0 : index
    %42 = vector.load %arg19[%c16, %c0_26] : memref<72x100xf32, #tpu.memory_space<vmem>>, vector<8x100xf32>
    tpu.vector_store %arg19[%c16, %c0_26], %41 {strides = array<i32>} : memref<72x100xf32, #tpu.memory_space<vmem>>, vector<8x100xf32>,
    %43 = vector.extract_strided_slice %36 {offsets = [0, 10], sizes = [8, 100], strides = [1, 1]} : vector<8x128xf32> to vector<8x100xf32>
    %c24 = arith.constant 24 : index
    %c0_27 = arith.constant 0 : index
    %44 = vector.load %arg19[%c24, %c0_27] : memref<72x100xf32, #tpu.memory_space<vmem>>, vector<8x100xf32>
    tpu.vector_store %arg19[%c24, %c0_27], %43 {strides = array<i32>} : memref<72x100xf32, #tpu.memory_space<vmem>>, vector<8x100xf32>,
    %45 = vector.extract_strided_slice %36 {offsets = [0, 11], sizes = [8, 100], strides = [1, 1]} : vector<8x128xf32> to vector<8x100xf32>
    %c32 = arith.constant 32 : index
    %c0_28 = arith.constant 0 : index
    %46 = vector.load %arg19[%c32, %c0_28] : memref<72x100xf32, #tpu.memory_space<vmem>>, vector<8x100xf32>
    tpu.vector_store %arg19[%c32, %c0_28], %45 {strides = array<i32>} : memref<72x100xf32, #tpu.memory_space<vmem>>, vector<8x100xf32>,
    %47 = vector.extract_strided_slice %36 {offsets = [0, 12], sizes = [8, 100], strides = [1, 1]} : vector<8x128xf32> to vector<8x100xf32>
    %c40 = arith.constant 40 : index
    %c0_29 = arith.constant 0 : index
    %48 = vector.load %arg19[%c40, %c0_29] : memref<72x100xf32, #tpu.memory_space<vmem>>, vector<8x100xf32>
    tpu.vector_store %arg19[%c40, %c0_29], %47 {strides = array<i32>} : memref<72x100xf32, #tpu.memory_space<vmem>>, vector<8x100xf32>,
    %49 = vector.extract_strided_slice %36 {offsets = [0, 20], sizes = [8, 100], strides = [1, 1]} : vector<8x128xf32> to vector<8x100xf32>
    %c48 = arith.constant 48 : index
    %c0_30 = arith.constant 0 : index
    %50 = vector.load %arg19[%c48, %c0_30] : memref<72x100xf32, #tpu.memory_space<vmem>>, vector<8x100xf32>
    tpu.vector_store %arg19[%c48, %c0_30], %49 {strides = array<i32>} : memref<72x100xf32, #tpu.memory_space<vmem>>, vector<8x100xf32>,
    %51 = vector.extract_strided_slice %36 {offsets = [0, 21], sizes = [8, 100], strides = [1, 1]} : vector<8x128xf32> to vector<8x100xf32>
    %c56 = arith.constant 56 : index
    %c0_31 = arith.constant 0 : index
    %52 = vector.load %arg19[%c56, %c0_31] : memref<72x100xf32, #tpu.memory_space<vmem>>, vector<8x100xf32>
    tpu.vector_store %arg19[%c56, %c0_31], %51 {strides = array<i32>} : memref<72x100xf32, #tpu.memory_space<vmem>>, vector<8x100xf32>,
    %53 = vector.extract_strided_slice %36 {offsets = [0, 22], sizes = [8, 100], strides = [1, 1]} : vector<8x128xf32> to vector<8x100xf32>
    %c64 = arith.constant 64 : index
    %c0_32 = arith.constant 0 : index
    %54 = vector.load %arg19[%c64, %c0_32] : memref<72x100xf32, #tpu.memory_space<vmem>>, vector<8x100xf32>
    tpu.vector_store %arg19[%c64, %c0_32], %53 {strides = array<i32>} : memref<72x100xf32, #tpu.memory_space<vmem>>, vector<8x100xf32>,
    %c0_33 = arith.constant 0 : index
    %c0_34 = arith.constant 0 : index
    %55 = vector.load %arg4[%c0_33, %c0_34] : memref<16x72xf32, #tpu.memory_space<vmem>>, vector<16x72xf32>
    %c0_35 = arith.constant 0 : index
    %c0_36 = arith.constant 0 : index
    %56 = vector.load %arg19[%c0_35, %c0_36] : memref<72x100xf32, #tpu.memory_space<vmem>>, vector<72x100xf32>
    %cst_37 = arith.constant dense<0.000000e+00> : vector<16x100xf32>
    %57 = tpu.matmul %55, %56, %cst_37 {dimension_numbers = #tpu.dot_dimension_numbers<[1], [0], [0], [1], [0, 0, 1, 1], [], []>} : vector<16x72xf32>, vector<72x100xf32>, vector<16x100xf32> -> vector<16x100xf32>
    %c0_38 = arith.constant 0 : index
    %c0_39 = arith.constant 0 : index
    %58 = vector.load %arg5[%c0_38, %c0_39] : memref<16x1xf32, #tpu.memory_space<vmem>>, vector<16x1xf32>
    %59 = vector.broadcast %58 : vector<16x1xf32> to vector<16x100xf32>
    %60 = arith.addf %57, %59 : vector<16x100xf32>
    %cst_40 = arith.constant 0.000000e+00 : f32
    %61 = vector.broadcast %cst_40 : f32 to vector<16x100xf32>
    %62 = arith.maximumf %60, %61 : vector<16x100xf32>
    %63 = vector.extract_strided_slice %62 {offsets = [0, 0], sizes = [16, 89], strides = [1, 1]} : vector<16x100xf32> to vector<16x89xf32>
    %64 = vector.extract_strided_slice %62 {offsets = [0, 1], sizes = [16, 89], strides = [1, 1]} : vector<16x100xf32> to vector<16x89xf32>
    %65 = arith.maximumf %63, %64 : vector<16x89xf32>
    %66 = vector.extract_strided_slice %62 {offsets = [0, 10], sizes = [16, 89], strides = [1, 1]} : vector<16x100xf32> to vector<16x89xf32>
    %67 = vector.extract_strided_slice %62 {offsets = [0, 11], sizes = [16, 89], strides = [1, 1]} : vector<16x100xf32> to vector<16x89xf32>
    %68 = arith.maximumf %66, %67 : vector<16x89xf32>
    %69 = arith.maximumf %65, %68 : vector<16x89xf32>
    %c0_41 = arith.constant 0 : index
    %c0_42 = arith.constant 0 : index
    %70 = vector.load %arg11[%c0_41, %c0_42] : memref<89x128xf32, #tpu.memory_space<vmem>>, vector<89x128xf32>
    %cst_43 = arith.constant dense<0.000000e+00> : vector<16x128xf32>
    %71 = tpu.matmul %69, %70, %cst_43 {dimension_numbers = #tpu.dot_dimension_numbers<[1], [0], [0], [1], [0, 0, 1, 1], [], []>} : vector<16x89xf32>, vector<89x128xf32>, vector<16x128xf32> -> vector<16x128xf32>
    %72 = vector.extract_strided_slice %71 {offsets = [0, 0], sizes = [16, 36], strides = [1, 1]} : vector<16x128xf32> to vector<16x36xf32>
    %c0_44 = arith.constant 0 : index
    %c0_45 = arith.constant 0 : index
    %73 = vector.load %arg20[%c0_44, %c0_45] : memref<144x36xf32, #tpu.memory_space<vmem>>, vector<16x36xf32>
    tpu.vector_store %arg20[%c0_44, %c0_45], %72 {strides = array<i32>} : memref<144x36xf32, #tpu.memory_space<vmem>>, vector<16x36xf32>,
    %74 = vector.extract_strided_slice %71 {offsets = [0, 1], sizes = [16, 36], strides = [1, 1]} : vector<16x128xf32> to vector<16x36xf32>
    %c16_46 = arith.constant 16 : index
    %c0_47 = arith.constant 0 : index
    %75 = vector.load %arg20[%c16_46, %c0_47] : memref<144x36xf32, #tpu.memory_space<vmem>>, vector<16x36xf32>
    tpu.vector_store %arg20[%c16_46, %c0_47], %74 {strides = array<i32>} : memref<144x36xf32, #tpu.memory_space<vmem>>, vector<16x36xf32>,
    %76 = vector.extract_strided_slice %71 {offsets = [0, 2], sizes = [16, 36], strides = [1, 1]} : vector<16x128xf32> to vector<16x36xf32>
    %c32_48 = arith.constant 32 : index
    %c0_49 = arith.constant 0 : index
    %77 = vector.load %arg20[%c32_48, %c0_49] : memref<144x36xf32, #tpu.memory_space<vmem>>, vector<16x36xf32>
    tpu.vector_store %arg20[%c32_48, %c0_49], %76 {strides = array<i32>} : memref<144x36xf32, #tpu.memory_space<vmem>>, vector<16x36xf32>,
    %78 = vector.extract_strided_slice %71 {offsets = [0, 6], sizes = [16, 36], strides = [1, 1]} : vector<16x128xf32> to vector<16x36xf32>
    %c48_50 = arith.constant 48 : index
    %c0_51 = arith.constant 0 : index
    %79 = vector.load %arg20[%c48_50, %c0_51] : memref<144x36xf32, #tpu.memory_space<vmem>>, vector<16x36xf32>
    tpu.vector_store %arg20[%c48_50, %c0_51], %78 {strides = array<i32>} : memref<144x36xf32, #tpu.memory_space<vmem>>, vector<16x36xf32>,
    %80 = vector.extract_strided_slice %71 {offsets = [0, 7], sizes = [16, 36], strides = [1, 1]} : vector<16x128xf32> to vector<16x36xf32>
    %c64_52 = arith.constant 64 : index
    %c0_53 = arith.constant 0 : index
    %81 = vector.load %arg20[%c64_52, %c0_53] : memref<144x36xf32, #tpu.memory_space<vmem>>, vector<16x36xf32>
    tpu.vector_store %arg20[%c64_52, %c0_53], %80 {strides = array<i32>} : memref<144x36xf32, #tpu.memory_space<vmem>>, vector<16x36xf32>,
    %82 = vector.extract_strided_slice %71 {offsets = [0, 8], sizes = [16, 36], strides = [1, 1]} : vector<16x128xf32> to vector<16x36xf32>
    %c80 = arith.constant 80 : index
    %c0_54 = arith.constant 0 : index
    %83 = vector.load %arg20[%c80, %c0_54] : memref<144x36xf32, #tpu.memory_space<vmem>>, vector<16x36xf32>
    tpu.vector_store %arg20[%c80, %c0_54], %82 {strides = array<i32>} : memref<144x36xf32, #tpu.memory_space<vmem>>, vector<16x36xf32>,
    %84 = vector.extract_strided_slice %71 {offsets = [0, 12], sizes = [16, 36], strides = [1, 1]} : vector<16x128xf32> to vector<16x36xf32>
    %c96 = arith.constant 96 : index
    %c0_55 = arith.constant 0 : index
    %85 = vector.load %arg20[%c96, %c0_55] : memref<144x36xf32, #tpu.memory_space<vmem>>, vector<16x36xf32>
    tpu.vector_store %arg20[%c96, %c0_55], %84 {strides = array<i32>} : memref<144x36xf32, #tpu.memory_space<vmem>>, vector<16x36xf32>,
    %86 = vector.extract_strided_slice %71 {offsets = [0, 13], sizes = [16, 36], strides = [1, 1]} : vector<16x128xf32> to vector<16x36xf32>
    %c112 = arith.constant 112 : index
    %c0_56 = arith.constant 0 : index
    %87 = vector.load %arg20[%c112, %c0_56] : memref<144x36xf32, #tpu.memory_space<vmem>>, vector<16x36xf32>
    tpu.vector_store %arg20[%c112, %c0_56], %86 {strides = array<i32>} : memref<144x36xf32, #tpu.memory_space<vmem>>, vector<16x36xf32>,
    %88 = vector.extract_strided_slice %71 {offsets = [0, 14], sizes = [16, 36], strides = [1, 1]} : vector<16x128xf32> to vector<16x36xf32>
    %c128 = arith.constant 128 : index
    %c0_57 = arith.constant 0 : index
    %89 = vector.load %arg20[%c128, %c0_57] : memref<144x36xf32, #tpu.memory_space<vmem>>, vector<16x36xf32>
    tpu.vector_store %arg20[%c128, %c0_57], %88 {strides = array<i32>} : memref<144x36xf32, #tpu.memory_space<vmem>>, vector<16x36xf32>,
    %c0_58 = arith.constant 0 : index
    %c0_59 = arith.constant 0 : index
    %90 = vector.load %arg6[%c0_58, %c0_59] : memref<32x144xf32, #tpu.memory_space<vmem>>, vector<32x144xf32>
    %c0_60 = arith.constant 0 : index
    %c0_61 = arith.constant 0 : index
    %91 = vector.load %arg20[%c0_60, %c0_61] : memref<144x36xf32, #tpu.memory_space<vmem>>, vector<144x36xf32>
    %cst_62 = arith.constant dense<0.000000e+00> : vector<32x36xf32>
    %92 = tpu.matmul %90, %91, %cst_62 {dimension_numbers = #tpu.dot_dimension_numbers<[1], [0], [0], [1], [0, 0, 1, 1], [], []>} : vector<32x144xf32>, vector<144x36xf32>, vector<32x36xf32> -> vector<32x36xf32>
    %c0_63 = arith.constant 0 : index
    %c0_64 = arith.constant 0 : index
    %93 = vector.load %arg7[%c0_63, %c0_64] : memref<32x1xf32, #tpu.memory_space<vmem>>, vector<32x1xf32>
    %94 = vector.broadcast %93 : vector<32x1xf32> to vector<32x36xf32>
    %95 = arith.addf %92, %94 : vector<32x36xf32>
    %cst_65 = arith.constant 0.000000e+00 : f32
    %96 = vector.broadcast %cst_65 : f32 to vector<32x36xf32>
    %97 = arith.maximumf %95, %96 : vector<32x36xf32>
    %98 = vector.extract_strided_slice %97 {offsets = [0, 0], sizes = [32, 29], strides = [1, 1]} : vector<32x36xf32> to vector<32x29xf32>
    %99 = vector.extract_strided_slice %97 {offsets = [0, 1], sizes = [32, 29], strides = [1, 1]} : vector<32x36xf32> to vector<32x29xf32>
    %100 = arith.maximumf %98, %99 : vector<32x29xf32>
    %101 = vector.extract_strided_slice %97 {offsets = [0, 6], sizes = [32, 29], strides = [1, 1]} : vector<32x36xf32> to vector<32x29xf32>
    %102 = vector.extract_strided_slice %97 {offsets = [0, 7], sizes = [32, 29], strides = [1, 1]} : vector<32x36xf32> to vector<32x29xf32>
    %103 = arith.maximumf %101, %102 : vector<32x29xf32>
    %104 = arith.maximumf %100, %103 : vector<32x29xf32>
    %c0_66 = arith.constant 0 : index
    %c0_67 = arith.constant 0 : index
    %105 = vector.load %arg12[%c0_66, %c0_67] : memref<29x128xf32, #tpu.memory_space<vmem>>, vector<29x128xf32>
    %cst_68 = arith.constant dense<0.000000e+00> : vector<32x128xf32>
    %106 = tpu.matmul %104, %105, %cst_68 {dimension_numbers = #tpu.dot_dimension_numbers<[1], [0], [0], [1], [0, 0, 1, 1], [], []>} : vector<32x29xf32>, vector<29x128xf32>, vector<32x128xf32> -> vector<32x128xf32>
    %107 = vector.extract_strided_slice %106 {offsets = [0, 0], sizes = [32, 16], strides = [1, 1]} : vector<32x128xf32> to vector<32x16xf32>
    %c0_69 = arith.constant 0 : index
    %c0_70 = arith.constant 0 : index
    %108 = vector.load %arg21[%c0_69, %c0_70] : memref<288x16xf32, #tpu.memory_space<vmem>>, vector<32x16xf32>
    tpu.vector_store %arg21[%c0_69, %c0_70], %107 {strides = array<i32>} : memref<288x16xf32, #tpu.memory_space<vmem>>, vector<32x16xf32>,
    %109 = vector.extract_strided_slice %106 {offsets = [0, 1], sizes = [32, 16], strides = [1, 1]} : vector<32x128xf32> to vector<32x16xf32>
    %c32_71 = arith.constant 32 : index
    %c0_72 = arith.constant 0 : index
    %110 = vector.load %arg21[%c32_71, %c0_72] : memref<288x16xf32, #tpu.memory_space<vmem>>, vector<32x16xf32>
    tpu.vector_store %arg21[%c32_71, %c0_72], %109 {strides = array<i32>} : memref<288x16xf32, #tpu.memory_space<vmem>>, vector<32x16xf32>,
    %111 = vector.extract_strided_slice %106 {offsets = [0, 2], sizes = [32, 16], strides = [1, 1]} : vector<32x128xf32> to vector<32x16xf32>
    %c64_73 = arith.constant 64 : index
    %c0_74 = arith.constant 0 : index
    %112 = vector.load %arg21[%c64_73, %c0_74] : memref<288x16xf32, #tpu.memory_space<vmem>>, vector<32x16xf32>
    tpu.vector_store %arg21[%c64_73, %c0_74], %111 {strides = array<i32>} : memref<288x16xf32, #tpu.memory_space<vmem>>, vector<32x16xf32>,
    %113 = vector.extract_strided_slice %106 {offsets = [0, 4], sizes = [32, 16], strides = [1, 1]} : vector<32x128xf32> to vector<32x16xf32>
    %c96_75 = arith.constant 96 : index
    %c0_76 = arith.constant 0 : index
    %114 = vector.load %arg21[%c96_75, %c0_76] : memref<288x16xf32, #tpu.memory_space<vmem>>, vector<32x16xf32>
    tpu.vector_store %arg21[%c96_75, %c0_76], %113 {strides = array<i32>} : memref<288x16xf32, #tpu.memory_space<vmem>>, vector<32x16xf32>,
    %115 = vector.extract_strided_slice %106 {offsets = [0, 5], sizes = [32, 16], strides = [1, 1]} : vector<32x128xf32> to vector<32x16xf32>
    %c128_77 = arith.constant 128 : index
    %c0_78 = arith.constant 0 : index
    %116 = vector.load %arg21[%c128_77, %c0_78] : memref<288x16xf32, #tpu.memory_space<vmem>>, vector<32x16xf32>
    tpu.vector_store %arg21[%c128_77, %c0_78], %115 {strides = array<i32>} : memref<288x16xf32, #tpu.memory_space<vmem>>, vector<32x16xf32>,
    %117 = vector.extract_strided_slice %106 {offsets = [0, 6], sizes = [32, 16], strides = [1, 1]} : vector<32x128xf32> to vector<32x16xf32>
    %c160 = arith.constant 160 : index
    %c0_79 = arith.constant 0 : index
    %118 = vector.load %arg21[%c160, %c0_79] : memref<288x16xf32, #tpu.memory_space<vmem>>, vector<32x16xf32>
    tpu.vector_store %arg21[%c160, %c0_79], %117 {strides = array<i32>} : memref<288x16xf32, #tpu.memory_space<vmem>>, vector<32x16xf32>,
    %119 = vector.extract_strided_slice %106 {offsets = [0, 8], sizes = [32, 16], strides = [1, 1]} : vector<32x128xf32> to vector<32x16xf32>
    %c192 = arith.constant 192 : index
    %c0_80 = arith.constant 0 : index
    %120 = vector.load %arg21[%c192, %c0_80] : memref<288x16xf32, #tpu.memory_space<vmem>>, vector<32x16xf32>
    tpu.vector_store %arg21[%c192, %c0_80], %119 {strides = array<i32>} : memref<288x16xf32, #tpu.memory_space<vmem>>, vector<32x16xf32>,
    %121 = vector.extract_strided_slice %106 {offsets = [0, 9], sizes = [32, 16], strides = [1, 1]} : vector<32x128xf32> to vector<32x16xf32>
    %c224 = arith.constant 224 : index
    %c0_81 = arith.constant 0 : index
    %122 = vector.load %arg21[%c224, %c0_81] : memref<288x16xf32, #tpu.memory_space<vmem>>, vector<32x16xf32>
    tpu.vector_store %arg21[%c224, %c0_81], %121 {strides = array<i32>} : memref<288x16xf32, #tpu.memory_space<vmem>>, vector<32x16xf32>,
    %123 = vector.extract_strided_slice %106 {offsets = [0, 10], sizes = [32, 16], strides = [1, 1]} : vector<32x128xf32> to vector<32x16xf32>
    %c256 = arith.constant 256 : index
    %c0_82 = arith.constant 0 : index
    %124 = vector.load %arg21[%c256, %c0_82] : memref<288x16xf32, #tpu.memory_space<vmem>>, vector<32x16xf32>
    tpu.vector_store %arg21[%c256, %c0_82], %123 {strides = array<i32>} : memref<288x16xf32, #tpu.memory_space<vmem>>, vector<32x16xf32>,
    %c0_83 = arith.constant 0 : index
    %c0_84 = arith.constant 0 : index
    %125 = vector.load %arg8[%c0_83, %c0_84] : memref<64x288xf32, #tpu.memory_space<vmem>>, vector<64x288xf32>
    %c0_85 = arith.constant 0 : index
    %c0_86 = arith.constant 0 : index
    %126 = vector.load %arg21[%c0_85, %c0_86] : memref<288x16xf32, #tpu.memory_space<vmem>>, vector<288x16xf32>
    %cst_87 = arith.constant dense<0.000000e+00> : vector<64x16xf32>
    %127 = tpu.matmul %125, %126, %cst_87 {dimension_numbers = #tpu.dot_dimension_numbers<[1], [0], [0], [1], [0, 0, 1, 1], [], []>} : vector<64x288xf32>, vector<288x16xf32>, vector<64x16xf32> -> vector<64x16xf32>
    %c0_88 = arith.constant 0 : index
    %c0_89 = arith.constant 0 : index
    %128 = vector.load %arg9[%c0_88, %c0_89] : memref<64x1xf32, #tpu.memory_space<vmem>>, vector<64x1xf32>
    %129 = vector.broadcast %128 : vector<64x1xf32> to vector<64x16xf32>
    %130 = arith.addf %127, %129 : vector<64x16xf32>
    %cst_90 = arith.constant 0.000000e+00 : f32
    %131 = vector.broadcast %cst_90 : f32 to vector<64x16xf32>
    %132 = arith.maximumf %130, %131 : vector<64x16xf32>
    %c0_91 = arith.constant 0 : index
    %c0_92 = arith.constant 0 : index
    %133 = vector.load %arg13[%c0_91, %c0_92] : memref<64x16xf32, #tpu.memory_space<vmem>>, vector<64x16xf32>
    %134 = arith.mulf %132, %133 : vector<64x16xf32>
    %cst_93 = arith.constant dense<0.000000e+00> : vector<64xf32>
    %135 = vector.multi_reduction <add>, %134, %cst_93 [1] : vector<64x16xf32> to vector<64xf32>
    %136 = vector.shape_cast %135 : vector<64xf32> to vector<64x1xf32>
    %cst_94 = arith.constant dense<0.000000e+00> : vector<1xf32>
    %137 = vector.multi_reduction <add>, %136, %cst_94 [0] : vector<64x1xf32> to vector<1xf32>
    %138 = vector.shape_cast %137 : vector<1xf32> to vector<1x1xf32>
    %c0_95 = arith.constant 0 : index
    %c0_96 = arith.constant 0 : index
    %139 = vector.load %arg14[%c0_95, %c0_96] : memref<1x3xf32, #tpu.memory_space<vmem>>, vector<1x3xf32>
    %c0_97 = arith.constant 0 : index
    %c0_98 = arith.constant 0 : index
    %c0_99 = arith.constant 0 : index
    %140 = vector.load %arg15[%c0_97, %c0_98, %c0_99] : memref<1x1x3xf32, #tpu.memory_space<vmem>>, vector<1x1x3xf32>
    %141 = vector.shape_cast %140 : vector<1x1x3xf32> to vector<1x3xf32>
    %142 = arith.mulf %139, %141 : vector<1x3xf32>
    %cst_100 = arith.constant dense<0.000000e+00> : vector<1xf32>
    %143 = vector.multi_reduction <add>, %142, %cst_100 [1] : vector<1x3xf32> to vector<1xf32>
    %144 = vector.shape_cast %143 : vector<1xf32> to vector<1x1xf32>
    %145 = arith.addf %138, %144 : vector<1x1xf32>
    %c0_101 = arith.constant 0 : index
    %c0_102 = arith.constant 0 : index
    %146 = vector.load %arg16[%c0_101, %c0_102] : memref<1x1xf32, #tpu.memory_space<vmem>>, vector<1x1xf32>
    %147 = arith.addf %145, %146 : vector<1x1xf32>
    %cst_103 = arith.constant 0.000000e+00 : f32
    %148 = vector.broadcast %cst_103 : f32 to vector<1x1xf32>
    %149 = arith.subf %148, %147 : vector<1x1xf32>
    %150 = math.exp %149 : vector<1x1xf32>
    %cst_104 = arith.constant 1.000000e+00 : f32
    %151 = vector.broadcast %cst_104 : f32 to vector<1x1xf32>
    %152 = arith.addf %151, %150 : vector<1x1xf32>
    %153 = tpu.reciprocal %152 : vector<1x1xf32> -> vector<1x1xf32>
    %c0_105 = arith.constant 0 : index
    %c0_106 = arith.constant 0 : index
    %c0_107 = arith.constant 0 : index
    %154 = vector.load %arg17[%c0_105, %c0_106, %c0_107] : memref<1x1x1xf32, #tpu.memory_space<vmem>>, vector<1x1x1xf32>
    %155 = vector.shape_cast %154 : vector<1x1x1xf32> to vector<1x1xf32>
    %156 = vector.shape_cast %153 : vector<1x1xf32> to vector<1x1x1xf32>
    tpu.vector_store %arg17[%c0_105, %c0_106, %c0_107], %156 {strides = array<i32>} : memref<1x1x1xf32, #tpu.memory_space<vmem>>, vector<1x1x1xf32>,
    return
  }
  func.func @transform_0(%arg0: i32) -> (i32, i32, i32) {
    %c0_i32 = arith.constant 0 : i32
    %c0_i32_0 = arith.constant 0 : i32
    %c0_i32_1 = arith.constant 0 : i32
    return %arg0, %c0_i32, %c0_i32_0 : i32, i32, i32
  }
  func.func @transform_1(%arg0: i32) -> (i32, i32) {
    %c0_i32 = arith.constant 0 : i32
    %c0_i32_0 = arith.constant 0 : i32
    %c0_i32_1 = arith.constant 0 : i32
    return %c0_i32, %c0_i32_0 : i32, i32
  }
  func.func @transform_2(%arg0: i32) -> (i32, i32) {
    %c0_i32 = arith.constant 0 : i32
    %c0_i32_0 = arith.constant 0 : i32
    %c0_i32_1 = arith.constant 0 : i32
    return %c0_i32, %c0_i32_0 : i32, i32
  }
  func.func @transform_3(%arg0: i32) -> (i32, i32) {
    %c0_i32 = arith.constant 0 : i32
    %c0_i32_0 = arith.constant 0 : i32
    %c0_i32_1 = arith.constant 0 : i32
    return %c0_i32, %c0_i32_0 : i32, i32
  }
  func.func @transform_4(%arg0: i32) -> (i32, i32) {
    %c0_i32 = arith.constant 0 : i32
    %c0_i32_0 = arith.constant 0 : i32
    %c0_i32_1 = arith.constant 0 : i32
    return %c0_i32, %c0_i32_0 : i32, i32
  }
  func.func @transform_5(%arg0: i32) -> (i32, i32) {
    %c0_i32 = arith.constant 0 : i32
    %c0_i32_0 = arith.constant 0 : i32
    %c0_i32_1 = arith.constant 0 : i32
    return %c0_i32, %c0_i32_0 : i32, i32
  }
  func.func @transform_6(%arg0: i32) -> (i32, i32) {
    %c0_i32 = arith.constant 0 : i32
    %c0_i32_0 = arith.constant 0 : i32
    %c0_i32_1 = arith.constant 0 : i32
    return %c0_i32, %c0_i32_0 : i32, i32
  }
  func.func @transform_7(%arg0: i32) -> (i32, i32) {
    %c0_i32 = arith.constant 0 : i32
    %c0_i32_0 = arith.constant 0 : i32
    %c0_i32_1 = arith.constant 0 : i32
    return %c0_i32, %c0_i32_0 : i32, i32
  }
  func.func @transform_8(%arg0: i32) -> (i32, i32) {
    %c0_i32 = arith.constant 0 : i32
    %c0_i32_0 = arith.constant 0 : i32
    %c0_i32_1 = arith.constant 0 : i32
    return %c0_i32, %c0_i32_0 : i32, i32
  }
  func.func @transform_9(%arg0: i32) -> (i32, i32) {
    %c0_i32 = arith.constant 0 : i32
    %c0_i32_0 = arith.constant 0 : i32
    %c0_i32_1 = arith.constant 0 : i32
    return %c0_i32, %c0_i32_0 : i32, i32
  }
  func.func @transform_10(%arg0: i32) -> (i32, i32) {
    %c0_i32 = arith.constant 0 : i32
    %c0_i32_0 = arith.constant 0 : i32
    %c0_i32_1 = arith.constant 0 : i32
    return %c0_i32, %c0_i32_0 : i32, i32
  }
  func.func @transform_11(%arg0: i32) -> (i32, i32) {
    %c0_i32 = arith.constant 0 : i32
    %c0_i32_0 = arith.constant 0 : i32
    %c0_i32_1 = arith.constant 0 : i32
    return %c0_i32, %c0_i32_0 : i32, i32
  }
  func.func @transform_12(%arg0: i32) -> (i32, i32) {
    %c0_i32 = arith.constant 0 : i32
    %c0_i32_0 = arith.constant 0 : i32
    %c0_i32_1 = arith.constant 0 : i32
    return %c0_i32, %c0_i32_0 : i32, i32
  }
  func.func @transform_13(%arg0: i32) -> (i32, i32) {
    %c0_i32 = arith.constant 0 : i32
    %c0_i32_0 = arith.constant 0 : i32
    %c0_i32_1 = arith.constant 0 : i32
    return %c0_i32, %c0_i32_0 : i32, i32
  }
  func.func @transform_14(%arg0: i32) -> (i32, i32, i32) {
    %c0_i32 = arith.constant 0 : i32
    %c0_i32_0 = arith.constant 0 : i32
    %c0_i32_1 = arith.constant 0 : i32
    return %arg0, %c0_i32, %c0_i32_0 : i32, i32, i32
  }
  func.func @transform_15(%arg0: i32) -> (i32, i32) {
    %c0_i32 = arith.constant 0 : i32
    %c0_i32_0 = arith.constant 0 : i32
    %c0_i32_1 = arith.constant 0 : i32
    return %c0_i32, %c0_i32_0 : i32, i32
  }
  func.func @transform_16(%arg0: i32) -> (i32, i32, i32) {
    %c0_i32 = arith.constant 0 : i32
    %c0_i32_0 = arith.constant 0 : i32
    %c0_i32_1 = arith.constant 0 : i32
    return %arg0, %c0_i32, %c0_i32_0 : i32, i32, i32
  }
}

</mosaic_0001>

<bundles_post_ra>
// kernel: classifier_forward.1
= control target key start
LH: loop header
LB: loop body
LE: loop exit
PB: predicated region body
PF: predicated region fallthrough
CT: control target
= control target key end

     0   :  { %s2873_s23 = smov 0   ;;  %s3464_s0 = inlined_call_operand.vmem [shape: f32[2,1,384], index: 0, kind: input, shape index: {}]   ;;  %s3465_s1 = inlined_call_operand.vmem [shape: f32[8,9], index: 1, kind: input, shape index: {}]   ;;  %s3466_s2 = inlined_call_operand.vmem [shape: f32[8,1], index: 2, kind: input, shape index: {}]   ;;  %s3467_s3 = inlined_call_operand.vmem [shape: f32[16,72], index: 3, kind: input, shape index: {}]   ;;  %s3468_s4 = inlined_call_operand.vmem [shape: f32[16,1], index: 4, kind: input, shape index: {}]   ;;  %s3469_s5 = inlined_call_operand.vmem [shape: f32[32,144], index: 5, kind: input, shape index: {}]   ;;  %s3470_s6 = inlined_call_operand.vmem [shape: f32[32,1], index: 6, kind: input, shape index: {}]   ;;  %s3471_s7 = inlined_call_operand.vmem [shape: f32[64,288], index: 7, kind: input, shape index: {}]   ;;  %s3472_s8 = inlined_call_operand.vmem [shape: f32[64,1], index: 8, kind: input, shape index: {}]   ;;  %s3473_s9 = inlined_call_operand.vmem [shape: f32[305,128], index: 9, kind: input, shape index: {}]   ;;  %s3474_s10 = inlined_call_operand.vmem [shape: f32[89,128], index: 10, kind: input, shape index: {}]   ;;  %s3475_s11 = inlined_call_operand.vmem [shape: f32[29,128], index: 11, kind: input, shape index: {}]   ;;  %s3476_s12 = inlined_call_operand.vmem [shape: f32[64,16], index: 12, kind: input, shape index: {}]   ;;  %s3477_s13 = inlined_call_operand.vmem [shape: f32[1,3], index: 13, kind: input, shape index: {}]   ;;  %s3478_s14 = inlined_call_operand.vmem [shape: f32[2,1,3], index: 14, kind: input, shape index: {}]   ;;  %s3479_s15 = inlined_call_operand.<no memory space> [shape: f32[1,1], index: 15, kind: input, shape index: {}]   ;;  %s3480_s16 = inlined_call_operand.vmem [shape: f32[2,1,1], index: 16, kind: output, shape index: {}]  }
   0x1   :  { %3481 = sst [smem:[#allocation7_spill]] %s3464_s0  ;;  %v21_v0 = vstv %s3479_s15 }
   0x2   :  { %22 = vst [vmem:[#allocation6] sm:$0x1] %v21_v0 }
   0x3 LB: > { %s2241_s24 = sadd.s32 4294967295, %s2757_s23   ;;  %p2245_p0 = scmp.ge.s32.totalorder %s2757_s23, 1  ;;  %s2757_s23 = sphi %s2873_s23, %s28_s23  }
   0x4   : > { %p471_p1 = scmp.lt.s32.totalorder %s2757_s23, 3 }
   0x6   : > { %p472_p2 = pnand %p2245_p0, %p471_p1 }
   0x7   : > { %p521_p3 = scmp.lt.s32.totalorder (!%p472_p2), %s2241_s24, 1  ;;  %v532_v1 = vlaneseq (!%p472_p2)  ;;  %s3482_s27 = sld [smem:[#allocation7_spill]] (!%p472_p2)  ;;  %v2767_v4 = vmov (!%p472_p2), 0.0   ;;  %v618_v5 = vld [vmem:[%s3466_s2] sm:$0xff] (!%p472_p2)  ;;  %v2768_v6 = vmov (!%p472_p2), 0   ;;  %vm560_vm1 = vcmask (!%p472_p2), 900096  }
   0x8   : > { %475 = sbr.rel (%p472_p2) target bundleno = 3097 (0xc19), region = 84  ;;  %s2759_s29 = smov (!%p472_p2), 110   ;;  %702 = vmatprep.mubr.f32.mxu1 (!%p472_p2), %v2767_v4  ;;  %2735 = vset.pattern.permute.xlu0 (!%p472_p2), %v2768_v6  ;;  %vm542_vm2 = vcmask (!%p472_p2), 1039360   ;;  %vm569_vm3 = vcmask (!%p472_p2), 891904   ;;  %vm551_vm4 = vcmask (!%p472_p2), 1031168   ;;  %vm587_vm5 = vcmask (!%p472_p2), 752640  }
   0x9   : > { %vm2887_vm0 = vcmp.lt.s32.totalorder (!%p472_p2), %v532_v1, 324  ;;  %s2760_s30 = smov (!%p472_p2), 127   ;;  %s2761_s0 = smov (!%p472_p2), 109   ;;  %2746 = vset.pattern.permute.xlu1 (!%p472_p2), %v2768_v6  ;;  %vm578_vm6 = vcmask (!%p472_p2), 883712   ;;  %vm605_vm7 = vcmask (!%p472_p2), 736256   ;;  %vm596_vm8 = vcmask (!%p472_p2), 744448  }
   0xa   : > { %s2762_s17 = smov (!%p472_p2), 126   ;;  %s2763_s18 = smov (!%p472_p2), 92   ;;  %vm628_vm9 = vcmask (!%p472_p2), 1040384   ;;  %vm2769_vm10 = vmmov (!%p472_p2), 1   ;;  %v611_v40 = vld [vmem:[%s3465_s1] sm:$0xff] (!%p472_p2)  ;;  %vm624_vm12 = vcmask (!%p472_p2), 72704  }
   0xb   : > { %s2764_s19 = smov (!%p472_p2), 108   ;;  %s2765_s20 = smov (!%p472_p2), 90   ;;  %vm2921_vm11 = vmpackc.low (!%p472_p2), %vm628_vm9, %vm2769_vm10  ;;  %v2770_v41 = vmov (!%p472_p2), 0.0|0.0   ;;  %vm2771_vm13 = vmmov (!%p472_p2), 0   ;;  %v832_v51 = vld [vmem:[%s3473_s9 + $0x80] sm:$0xff] (!%p472_p2)  ;;  %v833_v52 = vld [vmem:[%s3473_s9 + $0x88] sm:$0xff] (!%p472_p2) }
   0xc   : > { %s2766_s21 = smov (!%p472_p2), 91   ;;  %v816_v53 = vld [vmem:[%s3473_s9] sm:$0xff] (!%p472_p2)  ;;  %v2540_v55 = vpack.c.bf16 (!%p472_p2), %v833_v52, %v832_v51  ;;  %v817_v56 = vld [vmem:[%s3473_s9 + $0x8] sm:$0xff] (!%p472_p2)  ;;  %v834_v57 = vld [vmem:[%s3473_s9 + $0x90] sm:$0xff] (!%p472_p2)  ;;  %vm855_vm14 = vcmask (!%p472_p2), 400384   ;;  %vm1002_vm15 = vcmask (!%p472_p2), 818176  }
   0xd   : > { %v835_v58 = vld [vmem:[%s3473_s9 + $0x98] sm:$0xff] (!%p472_p2)  ;;  %v2542_v61 = vpack.c.bf16 (!%p472_p2), %v817_v56, %v816_v53  ;;  %v818_v63 = vld [vmem:[%s3473_s9 + $0x10] sm:$0xff] (!%p472_p2)  ;;  %v836_v1 = vld [vmem:[%s3473_s9 + $0xa0] sm:$0xff] (!%p472_p2)  ;;  %s2773_s25 = smov (!%p472_p2), 118   ;;  %s2774_s26 = smov (!%p472_p2), 116  }
   0xe   : > { %v2544_v62 = vpack.c.bf16 (!%p472_p2), %v835_v58, %v834_v57  ;;  %v819_v0 = vld [vmem:[%s3473_s9 + $0x18] sm:$0xff] (!%p472_p2)  ;;  %2541 = vmatprep.subr.bf16.mxu0 (!%p472_p2), %v2540_v55  ;;  %v830_v51 = vld [vmem:[%s3473_s9 + $0x70] sm:$0xff] (!%p472_p2)  ;;  %s2779_s22 = smov (!%p472_p2), 120  }
   0xf   : > { %s3488_s24 = smov (!%p521_p3, %s2241_s24), 1  ;;  %2543 = vmatpush3.bf16.msra.mxu0 %v2542_v61  ;;  %v2546_v3 = vpack.c.bf16 %v819_v0, %v818_v63  ;;  %v831_v53 = vld [vmem:[%s3473_s9 + $0x78] sm:$0xff] }
  0x10   : > { %s2700_s15 = smul.u32 3, %s3488_s24  ;;  %2545 = vmatprep.subr.bf16.mxu0 %v2544_v62 }
  0x12   : > { %s524_s28 = scalar_lea.vmem %s3482_s27, %s2700_s15  ;;  %s2775_s27 = smov 106  }
  0x13   : > { %v531_v2 = vld [vmem:[%s524_s28] sm:$0x7]  ;;  %2547 = vmatpush3.bf16.msra.mxu0 %v2546_v3  ;;  %s2776_s28 = smov 107  }
  0x14   : > { %557 = vrot.lane.b32.xlu1 %v531_v2, %s2759_s29  ;;  %539 = vrot.lane.b32.xlu0 %v531_v2, %s2760_s30  ;;  %536 = vst.msk [vmem:[#allocation2] ss:$8 sm:$0x7] %vm2887_vm0, %v531_v2 }
  0x18   : > { %566 = vrot.lane.b32.xlu1 %v531_v2, %s2761_s0  ;;  %548 = vrot.lane.b32.xlu0 %v531_v2, %s2762_s17  ;;  %s527_s0 = scalar_lea.vmem %s3478_s14, %s3488_s24 }
  0x1c   : > { %584 = vrot.lane.b32.xlu1 %v531_v2, %s2763_s18  ;;  %575 = vrot.lane.b32.xlu0 %v531_v2, %s2764_s19 }
  0x20   : > { %602 = vrot.lane.b32.xlu1 %v531_v2, %s2765_s20  ;;  %593 = vrot.lane.b32.xlu0 %v531_v2, %s2766_s21  ;;  %v837_v2 = vld [vmem:[%s3473_s9 + $0xa8] sm:$0xff]  ;;  %s2777_s20 = smov 122   ;;  %s2778_s21 = smov 121  }
  0x21   : > { %v2548_v6 = vpack.c.bf16 %v837_v2, %v836_v1 }
  0x23   : > { %2549 = vmatprep.subr.bf16.mxu0 %v2548_v6 }
  0x24   : > { %621 = vperm.xlu0 %2735, %v618_v5   ;;  %v848_v5 = vld [vmem:[%s3473_s9 + $0x100] sm:$0xff] }
  0x86   : > { %v558_v7 = vpop.permute.xlu1 %557  ;;  %v540_v8 = vpop.permute.xlu0 %539 }
  0x87   : > { %v559_v9 = vrot.slane %v558_v7, 1  ;;  %v541_v10 = vrot.slane %v540_v8, 1 }
  0x89   : > { %v561_v11 = vsel %vm560_vm1, %v558_v7, %v559_v9  ;;  %v543_v12 = vsel %vm542_vm2, %v540_v8, %v541_v10  ;;  %v820_v7 = vld [vmem:[%s3473_s9 + $0x20] sm:$0xff]  ;;  %v821_v8 = vld [vmem:[%s3473_s9 + $0x28] sm:$0xff] }
  0x8a   : > { %564 = vst.msk [vmem:[#allocation2 + $0x3] ss:$8 sm:$0x7] %vm2887_vm0, %v561_v11  ;;  %546 = vst.msk [vmem:[#allocation2 + $0x1] ss:$8 sm:$0x7] %vm2887_vm0, %v543_v12  ;;  %v567_v13 = vpop.permute.xlu1 %566  ;;  %v549_v14 = vpop.permute.xlu0 %548 }
  0x8b   : > { %v568_v15 = vrot.slane %v567_v13, 1  ;;  %v550_v16 = vrot.slane %v549_v14, 1  ;;  %v849_v9 = vld [vmem:[%s3473_s9 + $0x108] sm:$0xff]  ;;  %v838_v11 = vld [vmem:[%s3473_s9 + $0xb0] sm:$0xff]  ;;  %v839_v12 = vld [vmem:[%s3473_s9 + $0xb8] sm:$0xff] }
  0x8d   : > { %v570_v17 = vsel %vm569_vm3, %v567_v13, %v568_v15  ;;  %v552_v18 = vsel %vm551_vm4, %v549_v14, %v550_v16  ;;  %v2573_v13 = vpack.c.bf16 %v849_v9, %v848_v5  ;;  %v850_v14 = vld [vmem:[%s3473_s9 + $0x110] sm:$0xff]  ;;  %v851_v15 = vld [vmem:[%s3473_s9 + $0x118] sm:$0xff]  ;;  %v2550_v16 = vpack.c.bf16 %v821_v8, %v820_v7 }
  0x8e   : > { %573 = vst.msk [vmem:[#allocation2 + $0x4] ss:$8 sm:$0x7] %vm2887_vm0, %v570_v17  ;;  %555 = vst.msk [vmem:[#allocation2 + $0x2] ss:$8 sm:$0x7] %vm2887_vm0, %v552_v18  ;;  %v585_v19 = vpop.permute.xlu1 %584  ;;  %v576_v20 = vpop.permute.xlu0 %575  ;;  %v2552_v17 = vpack.c.bf16 %v839_v12, %v838_v11 }
  0x8f   : > { %v586_v21 = vrot.slane %v585_v19, 1  ;;  %v577_v22 = vrot.slane %v576_v20, 1  ;;  %v822_v18 = vld [vmem:[%s3473_s9 + $0x30] sm:$0xff]  ;;  %2551 = vmatpush3.bf16.msra.mxu0 %v2550_v16  ;;  %vm1380_vm3 = vcmask 130048   ;;  %vm1539_vm4 = vcmask 1044480  }
  0x90   : > { %2553 = vmatprep.subr.bf16.mxu0 %v2552_v17 }
  0x91   : > { %v588_v23 = vsel %vm587_vm5, %v585_v19, %v586_v21  ;;  %v579_v24 = vsel %vm578_vm6, %v576_v20, %v577_v22  ;;  %v823_v19 = vld [vmem:[%s3473_s9 + $0x38] sm:$0xff]  ;;  %v840_v20 = vld [vmem:[%s3473_s9 + $0xc0] sm:$0xff]  ;;  %v2576_v21 = vpack.c.bf16 %v851_v15, %v850_v14  ;;  %v841_v22 = vld [vmem:[%s3473_s9 + $0xc8] sm:$0xff]  ;;  %vm1526_vm6 = vcmask 236544  }
  0x92   : > { %591 = vst.msk [vmem:[#allocation2 + $0x6] ss:$8 sm:$0x7] %vm2887_vm0, %v588_v23  ;;  %582 = vst.msk [vmem:[#allocation2 + $0x5] ss:$8 sm:$0x7] %vm2887_vm0, %v579_v24  ;;  %v603_v25 = vpop.permute.xlu1 %602  ;;  %v594_v26 = vpop.permute.xlu0 %593 }
  0x93   : > { %v604_v27 = vrot.slane %v603_v25, 1  ;;  %v595_v28 = vrot.slane %v594_v26, 1  ;;  %v852_v23 = vld [vmem:[%s3473_s9 + $0x120] sm:$0xff]  ;;  %v853_v24 = vld [vmem:[%s3473_s9 + $0x128] sm:$0xff]  ;;  %vm2655_vm5 = vmpackc.low %vm1539_vm4, %vm2769_vm10 }
  0x94   : > { %v1037_v14 = vld [vmem:[%s3467_s3] sm:$0xff]  ;;  %v1049_v15 = vld [vmem:[%s3468_s4 + $0x8] sm:$0xff] }
  0x95   : > { %v606_v29 = vsel %vm605_vm7, %v603_v25, %v604_v27  ;;  %v597_v30 = vsel %vm596_vm8, %v594_v26, %v595_v28  ;;  %v2554_v25 = vpack.c.bf16 %v823_v19, %v822_v18  ;;  %v2556_v26 = vpack.c.bf16 %v841_v22, %v840_v20  ;;  %v824_v27 = vld [vmem:[%s3473_s9 + $0x40] sm:$0xff]  ;;  %v825_v28 = vld [vmem:[%s3473_s9 + $0x48] sm:$0xff] }
  0x96   : > { %609 = vst.msk [vmem:[#allocation2 + $0x18] ss:$8 sm:$0x7] %vm2887_vm0, %v606_v29  ;;  %600 = vst.msk [vmem:[#allocation2 + $0x7] ss:$8 sm:$0x7] %vm2887_vm0, %v597_v30  ;;  %v2579_v29 = vpack.c.bf16 %v853_v24, %v852_v23 }
  0x97   : > { %v842_v30 = vld [vmem:[%s3473_s9 + $0xd0] sm:$0xff]  ;;  %2555 = vmatpush3.bf16.msra.mxu0 %v2554_v25  ;;  %vm1060_vm0 = vcmask 588800   ;;  %vm1872_vm7 = vcmask 261120   ;;  %vm2171_vm8 = vcmask 16384  }
  0x98   : > { %2557 = vmatprep.subr.bf16.mxu0 %v2556_v26 }
  0x9d   : > { %v613_v32 = vld [vmem:[#allocation2 + $0x8] sm:$0xff]  ;;  %v616_v33 = vld [vmem:[#allocation2 + $0x20] sm:$0x1]  ;;  %v615_v36 = vld [vmem:[#allocation2 + $0x18] sm:$0x1] }
  0x9e   : > { %v612_v34 = vld [vmem:[#allocation2] sm:$0xff]  ;;  %v2530_v35 = vpack.c.bf16 %v616_v33, %v613_v32  ;;  %v614_v38 = vld [vmem:[#allocation2 + $0x10] sm:$0xff]  ;;  %v617_v39 = vld [vmem:[#allocation2 + $0x28] sm:$0x1]  ;;  %v2558_v33 = vpack.c.bf16 %v825_v28, %v824_v27 }
  0x9f   : > { %v2533_v37 = vpack.c.bf16 %v615_v36, %v612_v34  ;;  %v2537_v42 = vpack.c.bf16 %v617_v39, %v614_v38  ;;  %v843_v32 = vld [vmem:[%s3473_s9 + $0xd8] sm:$0xff]  ;;  %v844_v38 = vld [vmem:[%s3473_s9 + $0xe0] sm:$0xff]  ;;  %v845_v39 = vld [vmem:[%s3473_s9 + $0xe8] sm:$0xff] }
  0xa0   : > { %2532 = vmatprep.subr.msk.bf16.mxu1 %vm2921_vm11, %v2530_v35  ;;  %v2560_v34 = vpack.c.bf16 %v843_v32, %v842_v30  ;;  %v826_v35 = vld [vmem:[%s3473_s9 + $0x50] sm:$0xff]  ;;  %v827_v36 = vld [vmem:[%s3473_s9 + $0x58] sm:$0xff]  ;;  %2559 = vmatpush3.bf16.msra.mxu0 %v2558_v33 }
  0xa1   : > { %2535 = vmatpush1.bf16.msk.msra.mxu1 %vm2921_vm11, %v2533_v37  ;;  %v2562_v37 = vpack.c.bf16 %v827_v36, %v826_v35 }
  0xa2   : > { %2536 = vmatprep.subr.bf16.mxu1 %v2770_v41  ;;  %2561 = vmatprep.subr.bf16.mxu0 %v2560_v34 }
  0xa3   : > { %v622_v43 = vpop.permute.xlu0 %621 }
  0xa4   : > { %2248 = vmatmul.mubr.msk.f32.vlgmr.msra.gmra.mrb[0].mxu1 %vm624_vm12, %v611_v40  ;;  %2563 = vmatpush3.bf16.msra.mxu0 %v2562_v37 }
  0xa5   : > { %2539 = vmatpush3.bf16.msk.msra.mxu1 %vm2921_vm11, %v2537_v42  ;;  %2428 = vmatprep.mubr.msk.f32.mxu1 %vm2771_vm13, %v2767_v4  ;;  %v854_v42 = vld [vmem:[%s3473_s9 + $0x130] sm:$0x1] }
  0xa6   : > { %2572 = vmatprep.subr.bf16.mxu1 %v2770_v41 }
  0xa8   : > { %2429 = vmatmul.mubr.msk.f32.vlgmr.msra.gmra.mrb[2].mxu1 %vm624_vm12, %v611_v40  ;;  %v2564_v40 = vpack.c.bf16 %v845_v39, %v844_v38  ;;  %v1038_v38 = vld [vmem:[%s3467_s3 + $0x8] sm:$0xff]  ;;  %v1164_v39 = vld [vmem:[%s3474_s10] sm:$0xff] }
  0xa9   : > { %2445 = vmatprep.mubr.msk.f32.mxu1 %vm2771_vm13, %v2767_v4  ;;  %2574 = vmatpush3.bf16.msra.mxu1 %v2573_v13  ;;  %v1048_v13 = vld [vmem:[%s3468_s4] sm:$0xff] }
  0xaa   : > { %2575 = vmatprep.subr.bf16.mxu1 %v2770_v41  ;;  %2565 = vmatprep.subr.bf16.mxu0 %v2564_v40  ;;  %v1165_v40 = vld [vmem:[%s3474_s10 + $0x8] sm:$0xff] }
  0xad   : > { %2577 = vmatpush3.bf16.msra.mxu1 %v2576_v21 }
  0xae   : > { %2578 = vmatprep.subr.bf16.mxu1 %v2770_v41 }
  0xb1   : > { %2580 = vmatpush3.bf16.msra.mxu1 %v2579_v29 }
  0xb2   : > { %2443 = vmatprep.subr.mxu1 %v2767_v4  ;;  %v828_v4 = vld [vmem:[%s3473_s9 + $0x60] sm:$0xff] }
  0xb5   : > { %2444 = vmatpush3.msk.msra.mxu1 %vm628_vm9, %v854_v42  ;;  %v1166_v42 = vld [vmem:[%s3474_s10 + $0x10] sm:$0xff]  ;;  %vm2183_vm9 = vcmask 0  }
 0x177   : > { %v704_v44 = vpop.f32.mrb[0].mxu1 }
 0x178   : > { %v2938_v45 = vadd.f32 %v704_v44, %v622_v43  ;;  %v706_v46 = vpop.f32.mrb[1].mxu1 }
 0x179   : > { %v2940_v47 = vadd.f32 %v706_v46, %v622_v43  ;;  %v846_v46 = vld [vmem:[%s3473_s9 + $0xf0] sm:$0xff] }
 0x17a   : > { %v779_v48 = vmax.f32 %v2938_v45, 0.0 }
 0x17b   : > { %v780_v49 = vmax.f32 %v2940_v47, 0.0  ;;  %v775_v50 = vpop.f32.mrb[2].mxu1 }
 0x17c   : > { %v2430_v54 = vpop.f32.mrb[3].mxu1  ;;  %v2966_v60 = vadd.f32 %v775_v50, %v622_v43  ;;  %v829_v43 = vld [vmem:[%s3473_s9 + $0x68] sm:$0xff]  ;;  %v847_v50 = vld [vmem:[%s3473_s9 + $0xf8] sm:$0xff] }
 0x17d   : > { %v2736_v59 = vpack.i.bf16 %v779_v48, %v780_v49  ;;  %v2566_v44 = vpack.c.bf16 %v829_v43, %v828_v4  ;;  %v2568_v52 = vpack.c.bf16 %v847_v50, %v846_v46  ;;  %v2570_v54 = vpack.c.bf16 %v831_v53, %v830_v51  ;;  %v1167_v43 = vld [vmem:[%s3474_s10 + $0x18] sm:$0xff]  ;;  %v1168_v46 = vld [vmem:[%s3474_s10 + $0x20] sm:$0xff]  ;;  %v1169_v50 = vld [vmem:[%s3474_s10 + $0x28] sm:$0xff] }
 0x17e   : > { %v781_v10 = vmax.f32 %v2966_v60, 0.0  ;;  %v2597_v4 = vpack.c.bf16 %v1165_v40, %v1164_v39  ;;  %v2605_v53 = vpack.c.bf16 %v1169_v50, %v1168_v46 }
 0x17f   : > { %2737 = vrot.lane.b32.xlu1 %v2736_v59, %s2760_s30  ;;  %2567 = vmatpush3.bf16.msra.mxu0 %v2566_v44  ;;  %v2601_v44 = vpack.c.bf16 %v1167_v43, %v1166_v42 }
 0x180   : > { %2569 = vmatprep.subr.bf16.mxu0 %v2568_v52 }
 0x183   : > { %789 = vrot.lane.b32.xlu1 %v781_v10, %s2760_s30  ;;  %2571 = vmatpush3.bf16.msra.mxu0 %v2570_v54 }
 0x184   : > { %2598 = vmatprep.subr.bf16.mxu0 %v2597_v4 }
 0x1f1   : > { %v2738_v55 = vpop.permute.xlu1 %2737 }
 0x1f2   : > { %v2740_v56 = vunpack.i.h.bf16 %v2738_v55  ;;  %v2739_v57 = vunpack.i.l.bf16 %v2738_v55 }
 0x1f4   : > { %v791_v58 = vsel %vm542_vm2, %v2740_v56, %v2739_v57 }
 0x1f5   : > { %v790_v59 = vpop.permute.xlu1 %789  ;;  %v796_v0 = vmax.f32 %v779_v48, %v791_v58  ;;  %v1171_v58 = vld [vmem:[%s3474_s10 + $0x38] sm:$0xff] }
 0x1f6   : > { %v792_v61 = vsel %vm542_vm2, %v2739_v57, %v790_v59  ;;  %v798_v62 = vmax.f32 %v781_v10, %v790_v59  ;;  %v1170_v57 = vld [vmem:[%s3474_s10 + $0x30] sm:$0xff]  ;;  %vm1261_vm2 = vcmask 293888  }
 0x1f7   : > { %v797_v63 = vmax.f32 %v780_v49, %v792_v61 }
 0x1f8   : > { %806 = vrot.lane.b32.xlu1 %v798_v62, %s2759_s29 }
 0x1f9   : > { %v2741_v1 = vpack.i.bf16 %v796_v0, %v797_v63 }
 0x1fb   : > { %2742 = vrot.lane.b32.xlu0 %v2741_v1, %s2759_s29  ;;  %s2772_s29 = smov 117   ;;  %v1173_v1 = vld [vmem:[%s3474_s10 + $0x48] sm:$0xff] }
 0x26a   : > { %v807_v2 = vpop.permute.xlu1 %806 }
 0x26b   : > { %v815_v3 = vmax.f32 %v798_v62, %v807_v2 }
 0x26d   : > { %2446 = vmatmul.mubr.msk.f32.vlgmr.msra.gmra.mrb[4].mxu1 %vm855_vm14, %v815_v3  ;;  %v2743_v5 = vpop.permute.xlu0 %2742  ;;  %v1174_v3 = vld [vmem:[%s3474_s10 + $0x50] sm:$0xff] }
 0x26e   : > { %v2745_v6 = vunpack.i.h.bf16 %v2743_v5  ;;  %v2744_v7 = vunpack.i.l.bf16 %v2743_v5  ;;  %2466 = vmatprep.mubr.msk.f32.mxu1 %vm1060_vm0, %v1037_v14  ;;  %v1175_v5 = vld [vmem:[%s3474_s10 + $0x58] sm:$0x1]  ;;  %v1331_v14 = vld [vmem:[%s3469_s5 + $0x8] sm:$0xff] }
 0x270   : > { %v809_v60 = vsel %vm560_vm1, %v2744_v7, %v807_v2  ;;  %v808_v47 = vsel %vm560_vm1, %v2745_v6, %v2744_v7  ;;  %v2617_v6 = vpack.c.bf16 %v1175_v5, %v1174_v3  ;;  %vm1176_vm1 = vcmask 728064   ;;  %v1332_v3 = vld [vmem:[%s3469_s5 + $0x10] sm:$0xff]  ;;  %v1334_v5 = vld [vmem:[%s3469_s5 + $0x20] sm:$0xff] }
 0x271   : > { %v814_v49 = vmax.f32 %v797_v63, %v809_v60  ;;  %v813_v8 = vmax.f32 %v796_v0, %v808_v47  ;;  %v2609_v63 = vpack.c.bf16 %v1171_v58, %v1170_v57  ;;  %v1172_v0 = vld [vmem:[%s3474_s10 + $0x40] sm:$0xff] }
 0x272   : > { %v2613_v2 = vpack.c.bf16 %v1173_v1, %v1172_v0  ;;  %v1330_v1 = vld [vmem:[%s3469_s5] sm:$0xff] }
 0x273   : > { %926 = vmatprep.mubr.f32.mxu0 %v814_v49 }
 0x274   : > { %927 = vmatmul.mubr.f32.vlgmr.msra.gmra.mrb[0].mxu0 %v813_v8 }
 0x275   : > { %2600 = vmatpush3.bf16.msra.mxu0 %v2597_v4 }
 0x276   : > { %2602 = vmatprep.subr.bf16.mxu0 %v2601_v44 }
 0x279   : > { %2604 = vmatpush3.bf16.msra.mxu0 %v2601_v44 }
 0x27a   : > { %2606 = vmatprep.subr.bf16.mxu0 %v2605_v53 }
 0x27d   : > { %2608 = vmatpush3.bf16.msra.mxu0 %v2605_v53 }
 0x27e   : > { %2610 = vmatprep.subr.bf16.mxu0 %v2609_v63 }
 0x281   : > { %2612 = vmatpush3.bf16.msra.mxu0 %v2609_v63 }
 0x282   : > { %2614 = vmatprep.subr.bf16.mxu0 %v2613_v2 }
 0x285   : > { %2616 = vmatpush3.bf16.msra.mxu0 %v2613_v2  ;;  %v1333_v2 = vld [vmem:[%s3469_s5 + $0x18] sm:$0xff] }
 0x286   : > { %2619 = vmatprep.subr.msk.bf16.mxu0 %vm2921_vm11, %v2617_v6 }
 0x289   : > { %2622 = vmatpush3.bf16.msk.msra.mxu0 %vm2921_vm11, %v2617_v6  ;;  %v1337_v6 = vld [vmem:[%s3469_s5 + $0x38] sm:$0xff] }
 0x340   : > { %v998_v45 = vpop.f32.mrb[4].mxu1 }
 0x341   : > { %v2447_v48 = vpop.f32.mrb[5].mxu1 }
 0x347   : > { %v2312_v9 = vpop.f32.mrb[0].mxu0 }
 0x348   : > { %v2313_v10 = vpop.f32.mrb[1].mxu0 }
 0x349   : > { %v2314_v11 = vadd.f32 %v2313_v10, %v2312_v9 }
 0x34b   : > { %v999_v12 = vadd.f32 %v2314_v11, %v998_v45 }
 0x34d   : > { %1009 = vrot.lane.b32.xlu1 %v999_v12, %s2762_s17  ;;  %1005 = vrot.lane.b32.xlu0 %v999_v12, %s2760_s30  ;;  %1003 = vst.msk [vmem:[#allocation3] sm:$0xff] %vm1002_vm15, %v999_v12 }
 0x351   : > { %1017 = vrot.lane.b32.xlu1 %v999_v12, %s2772_s29  ;;  %1013 = vrot.lane.b32.xlu0 %v999_v12, %s2773_s25 }
 0x354   : > { %v1039_v22 = vld [vmem:[#allocation3] sm:$0xff] }
 0x355   : > { %1025 = vrot.lane.b32.xlu1 %v999_v12, %s2764_s19  ;;  %1021 = vrot.lane.b32.xlu0 %v999_v12, %s2774_s26  ;;  %s2780_s19 = smov 115  }
 0x359   : > { %1033 = vrot.lane.b32.xlu1 %v999_v12, %s2775_s27  ;;  %1029 = vrot.lane.b32.xlu0 %v999_v12, %s2776_s28  ;;  %s2781_s27 = smov 114  }
 0x35d   : > { %1052 = vperm.xlu0 %2735, %v1048_v13   ;;  %1057 = vperm.xlu1 %2746, %v1049_v15   ;;  %v1357_v15 = vld [vmem:[%s3470_s6 + $0x8] sm:$0xff] }
 0x3bf   : > { %v1010_v16 = vpop.permute.xlu1 %1009  ;;  %v1006_v17 = vpop.permute.xlu0 %1005 }
 0x3c0   : > { %1012 = vst.msk [vmem:[#allocation3 + $0x10] sm:$0xff] %vm1002_vm15, %v1010_v16  ;;  %1008 = vst.msk [vmem:[#allocation3 + $0x8] sm:$0xff] %vm1002_vm15, %v1006_v17  ;;  %v1356_v16 = vld [vmem:[%s3470_s6] sm:$0xff]  ;;  %v1359_v17 = vld [vmem:[%s3470_s6 + $0x18] sm:$0xff] }
 0x3c3   : > { %v1018_v18 = vpop.permute.xlu1 %1017  ;;  %v1014_v19 = vpop.permute.xlu0 %1013 }
 0x3c4   : > { %1020 = vst.msk [vmem:[#allocation3 + $0x20] sm:$0xff] %vm1002_vm15, %v1018_v18  ;;  %1016 = vst.msk [vmem:[#allocation3 + $0x18] sm:$0xff] %vm1002_vm15, %v1014_v19  ;;  %v1358_v18 = vld [vmem:[%s3470_s6 + $0x10] sm:$0xff] }
 0x3c7   : > { %v1026_v20 = vpop.permute.xlu1 %1025  ;;  %v1022_v21 = vpop.permute.xlu0 %1021  ;;  %v1040_v23 = vld [vmem:[#allocation3 + $0x8] sm:$0xff]  ;;  %v1041_v27 = vld [vmem:[#allocation3 + $0x10] sm:$0xff] }
 0x3c8   : > { %1028 = vst.msk [vmem:[#allocation3 + $0x30] sm:$0xff] %vm1002_vm15, %v1026_v20  ;;  %1024 = vst.msk [vmem:[#allocation3 + $0x28] sm:$0xff] %vm1002_vm15, %v1022_v21  ;;  %v2581_v24 = vpack.c.bf16 %v1040_v23, %v1039_v22 }
 0x3ca   : > { %2582 = vmatprep.subr.bf16.mxu1 %v2581_v24 }
 0x3cb   : > { %v1034_v25 = vpop.permute.xlu1 %1033  ;;  %v1030_v26 = vpop.permute.xlu0 %1029  ;;  %2584 = vmatpush3.bf16.msra.mxu1 %v2581_v24  ;;  %v1042_v28 = vld [vmem:[#allocation3 + $0x18] sm:$0xff]  ;;  %v1043_v30 = vld [vmem:[#allocation3 + $0x20] sm:$0xff] }
 0x3cc   : > { %1036 = vst.msk [vmem:[#allocation3 + $0x40] sm:$0xff] %vm1002_vm15, %v1034_v25  ;;  %1032 = vst.msk [vmem:[#allocation3 + $0x38] sm:$0xff] %vm1002_vm15, %v1030_v26  ;;  %v2585_v29 = vpack.c.bf16 %v1042_v28, %v1041_v27 }
 0x3ce   : > { %2586 = vmatprep.subr.bf16.mxu1 %v2585_v29 }
 0x3cf   : > { %2588 = vmatpush3.bf16.msra.mxu1 %v2585_v29  ;;  %v1044_v32 = vld [vmem:[#allocation3 + $0x28] sm:$0xff]  ;;  %v1045_v34 = vld [vmem:[#allocation3 + $0x30] sm:$0xff] }
 0x3d0   : > { %v2589_v33 = vpack.c.bf16 %v1044_v32, %v1043_v30 }
 0x3d2   : > { %2590 = vmatprep.subr.bf16.mxu1 %v2589_v33 }
 0x3d3   : > { %2592 = vmatpush3.bf16.msra.mxu1 %v2589_v33  ;;  %v1046_v35 = vld [vmem:[#allocation3 + $0x38] sm:$0xff]  ;;  %v1047_v37 = vld [vmem:[#allocation3 + $0x40] sm:$0xff] }
 0x3d4   : > { %v2593_v36 = vpack.c.bf16 %v1046_v35, %v1045_v34 }
 0x3d6   : > { %2594 = vmatprep.subr.bf16.mxu1 %v2593_v36 }
 0x3d7   : > { %2596 = vmatpush3.bf16.msra.mxu1 %v2593_v36 }
 0x3d8   : > { %2464 = vmatprep.subr.mxu1 %v1047_v37 }
 0x3db   : > { %2465 = vmatpush3.msra.mxu1 %v1047_v37 }
 0x3dc   : > { %2467 = vmatmul.mubr.msk.f32.vlgmr.msra.gmra.mrb[6].mxu1 %vm1060_vm0, %v1038_v38  ;;  %2623 = vmatprep.subr.bf16.mxu1 %v2770_v41  ;;  %v1058_v51 = vpop.permute.xlu1 %1057  ;;  %v1053_v54 = vpop.permute.xlu0 %1052 }
 0x3dd   : > { %2258 = vmatprep.mubr.msk.f32.mxu1 %vm1380_vm3, %v1331_v14 }
 0x4af   : > { %v2468_v52 = vpop.f32.mrb[6].mxu1 }
 0x4b0   : > { %v1139_v55 = vadd.f32 %v2468_v52, %v1058_v51  ;;  %v1133_v56 = vpop.f32.mrb[7].mxu1 }
 0x4b1   : > { %v1134_v59 = vadd.f32 %v1133_v56, %v1053_v54 }
 0x4b2   : > { %v1143_v61 = vmax.f32 %v1139_v55, 0.0 }
 0x4b3   : > { %v1142_v62 = vmax.f32 %v1134_v59, 0.0 }
 0x4b4   : > { %1148 = vrot.lane.b32.xlu1 %v1143_v61, %s2760_s30 }
 0x4b5   : > { %1146 = vrot.lane.b32.xlu0 %v1142_v62, %s2760_s30 }
 0x526   : > { %v1149_v7 = vpop.permute.xlu1 %1148 }
 0x527   : > { %v1153_v60 = vmax.f32 %v1143_v61, %v1149_v7  ;;  %v1147_v47 = vpop.permute.xlu0 %1146  ;;  %v1336_v7 = vld [vmem:[%s3469_s5 + $0x30] sm:$0xff] }
 0x528   : > { %v1152_v49 = vmax.f32 %v1142_v62, %v1147_v47 }
 0x529   : > { %1158 = vrot.lane.b32.xlu1 %v1153_v60, %s2773_s25 }
 0x52a   : > { %1156 = vrot.lane.b32.xlu0 %v1152_v49, %s2773_s25 }
 0x59b   : > { %v1159_v8 = vpop.permute.xlu1 %1158 }
 0x59c   : > { %v1157_v45 = vpop.permute.xlu0 %1156  ;;  %v1163_v9 = vmax.f32 %v1153_v60, %v1159_v8 }
 0x59d   : > { %v1162_v48 = vmax.f32 %v1152_v49, %v1157_v45 }
 0x59f   : > { %2493 = vmatprep.mubr.msk.f32.mxu0 %vm1176_vm1, %v1162_v48 }
 0x5a0   : > { %2494 = vmatmul.mubr.msk.f32.vlgmr.msra.gmra.mrb[2].mxu0 %vm1176_vm1, %v1163_v9 }
 0x673   : > { %v2495_v10 = vpop.f32.mrb[2].mxu0 }
 0x674   : > { %1263 = vst.msk [vmem:[#allocation4 + $0x8] sm:$0xff] %vm1261_vm2, %v2495_v10  ;;  %1268 = vrot.lane.b32.xlu1 %v2495_v10, %s2760_s30  ;;  %v1252_v31 = vpop.f32.mrb[3].mxu0 }
 0x675   : > { %1262 = vst.msk [vmem:[#allocation4] sm:$0xff] %vm1261_vm2, %v1252_v31  ;;  %1266 = vrot.lane.b32.xlu0 %v1252_v31, %s2760_s30 }
 0x678   : > { %1276 = vrot.lane.b32.xlu1 %v2495_v10, %s2762_s17 }
 0x679   : > { %1274 = vrot.lane.b32.xlu0 %v1252_v31, %s2762_s17 }
 0x67b   : > { %v1339_v11 = vld [vmem:[#allocation4 + $0x8] sm:$0xff] }
 0x67c   : > { %1284 = vrot.lane.b32.xlu1 %v2495_v10, %s2777_s20  ;;  %v1338_v12 = vld [vmem:[#allocation4] sm:$0xff] }
 0x67d   : > { %1282 = vrot.lane.b32.xlu0 %v1252_v31, %s2777_s20  ;;  %v2624_v13 = vpack.c.bf16 %v1339_v11, %v1338_v12  ;;  %v1522_v11 = vld [vmem:[%s3475_s11] sm:$0xff]  ;;  %v1523_v12 = vld [vmem:[%s3475_s11 + $0x8] sm:$0xff] }
 0x67f   : > { %2625 = vmatpush1.bf16.msra.mxu1 %v2624_v13  ;;  %v1524_v13 = vld [vmem:[%s3475_s11 + $0x10] sm:$0xff] }
 0x680   : > { %1292 = vrot.lane.b32.xlu1 %v2495_v10, %s2778_s21  ;;  %2626 = vmatprep.subr.bf16.mxu1 %v2770_v41 }
 0x681   : > { %1290 = vrot.lane.b32.xlu0 %v1252_v31, %s2778_s21  ;;  %s2782_s21 = smov 123  }
 0x684   : > { %1300 = vrot.lane.b32.xlu1 %v2495_v10, %s2779_s22 }
 0x685   : > { %1298 = vrot.lane.b32.xlu0 %v1252_v31, %s2779_s22 }
 0x688   : > { %1308 = vrot.lane.b32.xlu1 %v2495_v10, %s2774_s26 }
 0x689   : > { %1306 = vrot.lane.b32.xlu0 %v1252_v31, %s2774_s26  ;;  %s2783_s26 = smov 119  }
 0x68c   : > { %1316 = vrot.lane.b32.xlu1 %v2495_v10, %s2780_s19 }
 0x68d   : > { %1314 = vrot.lane.b32.xlu0 %v1252_v31, %s2780_s19  ;;  %s2784_s19 = smov 124  }
 0x690   : > { %1324 = vrot.lane.b32.xlu1 %v2495_v10, %s2781_s27 }
 0x691   : > { %1322 = vrot.lane.b32.xlu0 %v1252_v31, %s2781_s27 }
 0x694   : > { %1367 = vperm.xlu1 %2746, %v1357_v15   ;;  %v2650_v15 = vpack.c.bf16 %v1523_v12, %v1522_v11 }
 0x695   : > { %1362 = vperm.xlu0 %2735, %v1356_v16   ;;  %v1525_v16 = vld [vmem:[%s3475_s11 + $0x18] sm:$0x1f] }
 0x698   : > { %1377 = vperm.xlu1 %2746, %v1359_v17  }
 0x699   : > { %1372 = vperm.xlu0 %2735, %v1358_v18  }
 0x6e6   : > { %v1269_v19 = vpop.permute.xlu1 %1268 }
 0x6e7   : > { %1273 = vst.msk [vmem:[#allocation4 + $0x18] sm:$0xff] %vm1261_vm2, %v1269_v19  ;;  %v1267_v20 = vpop.permute.xlu0 %1266  ;;  %v2654_v19 = vpack.c.bf16 %v1525_v16, %v1524_v13 }
 0x6e8   : > { %1272 = vst.msk [vmem:[#allocation4 + $0x10] sm:$0xff] %vm1261_vm2, %v1267_v20 }
 0x6ea   : > { %v1277_v21 = vpop.permute.xlu1 %1276 }
 0x6eb   : > { %1281 = vst.msk [vmem:[#allocation4 + $0x28] sm:$0xff] %vm1261_vm2, %v1277_v21  ;;  %v1275_v22 = vpop.permute.xlu0 %1274 }
 0x6ec   : > { %1280 = vst.msk [vmem:[#allocation4 + $0x20] sm:$0xff] %vm1261_vm2, %v1275_v22 }
 0x6ee   : > { %v1285_v23 = vpop.permute.xlu1 %1284  ;;  %v1341_v24 = vld [vmem:[#allocation4 + $0x18] sm:$0xff] }
 0x6ef   : > { %1289 = vst.msk [vmem:[#allocation4 + $0x38] sm:$0xff] %vm1261_vm2, %v1285_v23  ;;  %v1283_v25 = vpop.permute.xlu0 %1282  ;;  %v1340_v26 = vld [vmem:[#allocation4 + $0x10] sm:$0xff] }
 0x6f0   : > { %1288 = vst.msk [vmem:[#allocation4 + $0x30] sm:$0xff] %vm1261_vm2, %v1283_v25  ;;  %v2627_v27 = vpack.c.bf16 %v1341_v24, %v1340_v26 }
 0x6f2   : > { %v1293_v28 = vpop.permute.xlu1 %1292  ;;  %2628 = vmatpush1.bf16.msra.mxu1 %v2627_v27  ;;  %v1343_v29 = vld [vmem:[#allocation4 + $0x28] sm:$0xff] }
 0x6f3   : > { %1297 = vst.msk [vmem:[#allocation4 + $0x48] sm:$0xff] %vm1261_vm2, %v1293_v28  ;;  %v1291_v30 = vpop.permute.xlu0 %1290  ;;  %2629 = vmatprep.subr.bf16.mxu1 %v2770_v41  ;;  %v1342_v32 = vld [vmem:[#allocation4 + $0x20] sm:$0xff] }
 0x6f4   : > { %1296 = vst.msk [vmem:[#allocation4 + $0x40] sm:$0xff] %vm1261_vm2, %v1291_v30  ;;  %v2630_v33 = vpack.c.bf16 %v1343_v29, %v1342_v32 }
 0x6f6   : > { %v1301_v34 = vpop.permute.xlu1 %1300  ;;  %2631 = vmatpush1.bf16.msra.mxu1 %v2630_v33  ;;  %v1345_v35 = vld [vmem:[#allocation4 + $0x38] sm:$0xff] }
 0x6f7   : > { %1305 = vst.msk [vmem:[#allocation4 + $0x58] sm:$0xff] %vm1261_vm2, %v1301_v34  ;;  %v1299_v36 = vpop.permute.xlu0 %1298  ;;  %2632 = vmatprep.subr.bf16.mxu1 %v2770_v41  ;;  %v1344_v37 = vld [vmem:[#allocation4 + $0x30] sm:$0xff] }
 0x6f8   : > { %1304 = vst.msk [vmem:[#allocation4 + $0x50] sm:$0xff] %vm1261_vm2, %v1299_v36  ;;  %v2633_v38 = vpack.c.bf16 %v1345_v35, %v1344_v37 }
 0x6fa   : > { %v1309_v39 = vpop.permute.xlu1 %1308  ;;  %2634 = vmatpush1.bf16.msra.mxu1 %v2633_v38  ;;  %v1347_v40 = vld [vmem:[#allocation4 + $0x48] sm:$0xff] }
 0x6fb   : > { %1313 = vst.msk [vmem:[#allocation4 + $0x68] sm:$0xff] %vm1261_vm2, %v1309_v39  ;;  %v1307_v42 = vpop.permute.xlu0 %1306  ;;  %2635 = vmatprep.subr.bf16.mxu1 %v2770_v41  ;;  %v1346_v4 = vld [vmem:[#allocation4 + $0x40] sm:$0xff] }
 0x6fc   : > { %1312 = vst.msk [vmem:[#allocation4 + $0x60] sm:$0xff] %vm1261_vm2, %v1307_v42  ;;  %v2636_v43 = vpack.c.bf16 %v1347_v40, %v1346_v4 }
 0x6fe   : > { %v1317_v44 = vpop.permute.xlu1 %1316  ;;  %2637 = vmatpush1.bf16.msra.mxu1 %v2636_v43  ;;  %v1349_v46 = vld [vmem:[#allocation4 + $0x58] sm:$0xff] }
 0x6ff   : > { %1321 = vst.msk [vmem:[#allocation4 + $0x78] sm:$0xff] %vm1261_vm2, %v1317_v44  ;;  %v1315_v50 = vpop.permute.xlu0 %1314  ;;  %2638 = vmatprep.subr.bf16.mxu1 %v2770_v41  ;;  %v1348_v51 = vld [vmem:[#allocation4 + $0x50] sm:$0xff] }
 0x700   : > { %1320 = vst.msk [vmem:[#allocation4 + $0x70] sm:$0xff] %vm1261_vm2, %v1315_v50  ;;  %v2639_v52 = vpack.c.bf16 %v1349_v46, %v1348_v51 }
 0x702   : > { %v1325_v53 = vpop.permute.xlu1 %1324  ;;  %2640 = vmatpush1.bf16.msra.mxu1 %v2639_v52  ;;  %v1351_v54 = vld [vmem:[#allocation4 + $0x68] sm:$0xff] }
 0x703   : > { %1329 = vst.msk [vmem:[#allocation4 + $0x88] sm:$0xff] %vm1261_vm2, %v1325_v53  ;;  %v1323_v55 = vpop.permute.xlu0 %1322  ;;  %2641 = vmatprep.subr.bf16.mxu1 %v2770_v41  ;;  %v1350_v56 = vld [vmem:[#allocation4 + $0x60] sm:$0xff]  ;;  %v1765_v53 = vld [vmem:[%s3471_s7 + $0x8] sm:$0xff] }
 0x704   : > { %1328 = vst.msk [vmem:[#allocation4 + $0x80] sm:$0xff] %vm1261_vm2, %v1323_v55  ;;  %v2642_v57 = vpack.c.bf16 %v1351_v54, %v1350_v56  ;;  %1961 = vmatprep.mubr.f32.mxu0 %v1765_v53  ;;  %v1825_v54 = vld [vmem:[%s3472_s8 + $0x8] sm:$0xff]  ;;  %v1766_v55 = vld [vmem:[%s3471_s7 + $0x10] sm:$0xff]  ;;  %v1824_v56 = vld [vmem:[%s3472_s8] sm:$0xff] }
 0x706   : > { %2643 = vmatpush1.bf16.msra.mxu1 %v2642_v57  ;;  %v1353_v58 = vld [vmem:[#allocation4 + $0x78] sm:$0xff]  ;;  %v1827_v57 = vld [vmem:[%s3472_s8 + $0x18] sm:$0xff] }
 0x707   : > { %2644 = vmatprep.subr.bf16.mxu1 %v2770_v41  ;;  %v1352_v59 = vld [vmem:[#allocation4 + $0x70] sm:$0xff] }
 0x708   : > { %v2645_v61 = vpack.c.bf16 %v1353_v58, %v1352_v59  ;;  %v1826_v58 = vld [vmem:[%s3472_s8 + $0x10] sm:$0xff]  ;;  %v1829_v59 = vld [vmem:[%s3472_s8 + $0x28] sm:$0xff] }
 0x70a   : > { %2646 = vmatpush1.bf16.msra.mxu1 %v2645_v61  ;;  %v1355_v62 = vld [vmem:[#allocation4 + $0x88] sm:$0xff] }
 0x70b   : > { %2647 = vmatprep.subr.bf16.mxu1 %v2770_v41  ;;  %v1354_v63 = vld [vmem:[#allocation4 + $0x80] sm:$0xff]  ;;  %v1335_v41 = vld [vmem:[%s3469_s5 + $0x28] sm:$0xff]  ;;  %v1828_v61 = vld [vmem:[%s3472_s8 + $0x20] sm:$0xff] }
 0x70c   : > { %v2648_v0 = vpack.c.bf16 %v1355_v62, %v1354_v63  ;;  %v1831_v62 = vld [vmem:[%s3472_s8 + $0x38] sm:$0xff]  ;;  %v1830_v63 = vld [vmem:[%s3472_s8 + $0x30] sm:$0xff] }
 0x70e   : > { %2649 = vmatpush1.bf16.msra.mxu1 %v2648_v0 }
 0x70f   : > { %2651 = vmatprep.subr.bf16.mxu1 %v2650_v15 }
 0x711   : > { %1458 = vmatmul.mubr.f32.vlgmr.msra.gmra.mrb[8].mxu1 %v1330_v1 }
 0x712   : > { %2259 = vmatprep.mubr.msk.f32.mxu1 %vm1380_vm3, %v1333_v2  ;;  %2653 = vmatpush3.bf16.msra.mxu1 %v2650_v15 }
 0x713   : > { %v1368_v48 = vpop.permute.xlu1 %1367  ;;  %2656 = vmatprep.subr.msk.bf16.mxu1 %vm2655_vm5, %v2654_v19 }
 0x714   : > { %v1363_v60 = vpop.permute.xlu0 %1362 }
 0x715   : > { %1463 = vmatmul.mubr.f32.gmra.mrb[10].mxu1 %v1332_v3 }
 0x716   : > { %2260 = vmatprep.mubr.msk.f32.mxu1 %vm1380_vm3, %v1335_v41  ;;  %2659 = vmatpush3.bf16.msk.msra.mxu1 %vm2655_vm5, %v2654_v19 }
 0x717   : > { %v1378_v23 = vpop.permute.xlu1 %1377 }
 0x718   : > { %v1373_v17 = vpop.permute.xlu0 %1372 }
 0x719   : > { %1468 = vmatmul.mubr.f32.gmra.mrb[12].mxu1 %v1334_v5 }
 0x71a   : > { %2261 = vmatprep.mubr.msk.f32.mxu1 %vm1380_vm3, %v1337_v6 }
 0x71d   : > { %1473 = vmatmul.mubr.f32.gmra.mrb[14].mxu1 %v1336_v7 }
 0x7e4   : > { %v1459_v47 = vpop.f32.mrb[8].mxu1 }
 0x7e5   : > { %v1460_v49 = vadd.f32 %v1459_v47, %v1363_v60  ;;  %v1461_v8 = vpop.f32.mrb[9].mxu1 }
 0x7e7   : > { %v1478_v45 = vmax.f32 %v1460_v49, 0.0 }
 0x7e8   : > { %v1464_v9 = vpop.f32.mrb[10].mxu1 }
 0x7e9   : > { %v1465_v10 = vadd.f32 %v1464_v9, %v1368_v48  ;;  %v1466_v31 = vpop.f32.mrb[11].mxu1  ;;  %1486 = vrot.lane.b32.xlu0 %v1478_v45, %s2760_s30 }
 0x7eb   : > { %v1479_v14 = vmax.f32 %v1465_v10, 0.0 }
 0x7ec   : > { %v1469_v18 = vpop.f32.mrb[12].mxu1 }
 0x7ed   : > { %v1470_v20 = vadd.f32 %v1469_v18, %v1373_v17  ;;  %1488 = vrot.lane.b32.xlu1 %v1479_v14, %s2760_s30  ;;  %v1471_v21 = vpop.f32.mrb[13].mxu1 }
 0x7ef   : > { %v1480_v22 = vmax.f32 %v1470_v20, 0.0 }
 0x7f0   : > { %v1474_v24 = vpop.f32.mrb[14].mxu1 }
 0x7f1   : > { %v1475_v25 = vadd.f32 %v1474_v24, %v1378_v23  ;;  %1490 = vrot.lane.b32.xlu0 %v1480_v22, %s2760_s30  ;;  %v1476_v26 = vpop.f32.mrb[15].mxu1 }
 0x7f3   : > { %v1481_v27 = vmax.f32 %v1475_v25, 0.0 }
 0x7f5   : > { %1492 = vrot.lane.b32.xlu1 %v1481_v27, %s2760_s30 }
 0x85b   : > { %v1487_v28 = vpop.permute.xlu0 %1486 }
 0x85c   : > { %v1498_v29 = vmax.f32 %v1478_v45, %v1487_v28 }
 0x85e   : > { %1506 = vrot.lane.b32.xlu0 %v1498_v29, %s2777_s20 }
 0x85f   : > { %v1489_v30 = vpop.permute.xlu1 %1488 }
 0x860   : > { %v1499_v32 = vmax.f32 %v1479_v14, %v1489_v30 }
 0x862   : > { %1508 = vrot.lane.b32.xlu1 %v1499_v32, %s2777_s20 }
 0x863   : > { %v1491_v33 = vpop.permute.xlu0 %1490 }
 0x864   : > { %v1500_v34 = vmax.f32 %v1480_v22, %v1491_v33 }
 0x866   : > { %1510 = vrot.lane.b32.xlu0 %v1500_v34, %s2777_s20 }
 0x867   : > { %v1493_v35 = vpop.permute.xlu1 %1492 }
 0x868   : > { %v1501_v36 = vmax.f32 %v1481_v27, %v1493_v35 }
 0x86a   : > { %1512 = vrot.lane.b32.xlu1 %v1501_v36, %s2777_s20 }
 0x8d0   : > { %v1507_v37 = vpop.permute.xlu0 %1506 }
 0x8d1   : > { %v1518_v38 = vmax.f32 %v1498_v29, %v1507_v37 }
 0x8d3   : > { %2504 = vmatprep.mubr.msk.f32.mxu1 %vm1526_vm6, %v1518_v38 }
 0x8d4   : > { %v1509_v39 = vpop.permute.xlu1 %1508 }
 0x8d5   : > { %v1519_v40 = vmax.f32 %v1499_v32, %v1509_v39 }
 0x8d7   : > { %2505 = vmatmul.mubr.msk.f32.vlgmr.msra.gmra.mrb[16].mxu1 %vm1526_vm6, %v1519_v40 }
 0x8d8   : > { %v1511_v42 = vpop.permute.xlu0 %1510 }
 0x8d9   : > { %v1520_v4 = vmax.f32 %v1500_v34, %v1511_v42 }
 0x8db   : > { %2507 = vmatprep.mubr.msk.f32.mxu1 %vm1526_vm6, %v1520_v4 }
 0x8dc   : > { %v1513_v43 = vpop.permute.xlu1 %1512 }
 0x8dd   : > { %v1521_v44 = vmax.f32 %v1501_v36, %v1513_v43 }
 0x8df   : > { %2508 = vmatmul.mubr.msk.f32.gmra.mrb[18].mxu1 %vm1526_vm6, %v1521_v44 }
 0x8e0   : > { %2518 = vmatprep.mubr.msk.f32.mxu1 %vm1872_vm7, %v1766_v55 }
 0x9aa   : > { %v2506_v46 = vpop.f32.mrb[16].mxu1 }
 0x9ab   : > { %1629 = vst.msk [vmem:[#allocation5 + $0x8] sm:$0xff] %vm1380_vm3, %v2506_v46  ;;  %1686 = vrot.lane.b32.xlu1 %v2506_v46, %s2782_s21  ;;  %v1609_v50 = vpop.f32.mrb[17].mxu1 }
 0x9ac   : > { %1628 = vst.msk [vmem:[#allocation5] sm:$0xff] %vm1380_vm3, %v1609_v50  ;;  %1684 = vrot.lane.b32.xlu0 %v1609_v50, %s2782_s21 }
 0x9af   : > { %1702 = vrot.lane.b32.xlu1 %v2506_v46, %s2777_s20 }
 0x9b0   : > { %1700 = vrot.lane.b32.xlu0 %v1609_v50, %s2777_s20 }
 0x9b2   : > { %v2509_v51 = vpop.f32.mrb[18].mxu1  ;;  %v1789_v7 = vld [vmem:[#allocation5 + $0x8] sm:$0xff] }
 0x9b3   : > { %1631 = vst.msk [vmem:[#allocation5 + $0x18] sm:$0xff] %vm1380_vm3, %v2509_v51  ;;  %1638 = vrot.lane.b32.xlu1 %v2506_v46, %s2760_s30  ;;  %v1619_v52 = vpop.f32.mrb[19].mxu1  ;;  %v1788_v6 = vld [vmem:[#allocation5] sm:$0xff] }
 0x9b4   : > { %1630 = vst.msk [vmem:[#allocation5 + $0x10] sm:$0xff] %vm1380_vm3, %v1619_v52  ;;  %1636 = vrot.lane.b32.xlu0 %v1609_v50, %s2760_s30  ;;  %v2662_v8 = vpack.c.bf16 %v1789_v7, %v1788_v6 }
 0x9b7   : > { %1718 = vrot.lane.b32.xlu1 %v2506_v46, %s2779_s22 }
 0x9b8   : > { %1716 = vrot.lane.b32.xlu0 %v1609_v50, %s2779_s22 }
 0x9ba   : > { %v1791_v19 = vld [vmem:[#allocation5 + $0x18] sm:$0xff] }
 0x9bb   : > { %1654 = vrot.lane.b32.xlu1 %v2506_v46, %s2762_s17  ;;  %v1790_v18 = vld [vmem:[#allocation5 + $0x10] sm:$0xff] }
 0x9bc   : > { %1652 = vrot.lane.b32.xlu0 %v1609_v50, %s2762_s17  ;;  %v2666_v25 = vpack.c.bf16 %v1791_v19, %v1790_v18  ;;  %v1771_v18 = vld [vmem:[%s3471_s7 + $0x38] sm:$0xff] }
 0x9bf   : > { %1734 = vrot.lane.b32.xlu1 %v2506_v46, %s2783_s26 }
 0x9c0   : > { %1732 = vrot.lane.b32.xlu0 %v1609_v50, %s2783_s26 }
 0x9c3   : > { %1690 = vrot.lane.b32.xlu1 %v2509_v51, %s2782_s21 }
 0x9c4   : > { %1688 = vrot.lane.b32.xlu0 %v1619_v52, %s2782_s21 }
 0x9c7   : > { %1706 = vrot.lane.b32.xlu1 %v2509_v51, %s2777_s20 }
 0x9c8   : > { %1668 = vrot.lane.b32.xlu0 %v1609_v50, %s2784_s19 }
 0x9cb   : > { %1642 = vrot.lane.b32.xlu1 %v2509_v51, %s2760_s30 }
 0x9cc   : > { %1704 = vrot.lane.b32.xlu0 %v1619_v52, %s2777_s20  ;;  %s530_s20 = scalar_lea.vmem %s3480_s16, %s3488_s24 }
 0x9cf   : > { %1722 = vrot.lane.b32.xlu1 %v2509_v51, %s2779_s22 }
 0x9d0   : > { %1640 = vrot.lane.b32.xlu0 %v1619_v52, %s2760_s30 }
 0x9d3   : > { %1658 = vrot.lane.b32.xlu1 %v2509_v51, %s2762_s17 }
 0x9d4   : > { %1720 = vrot.lane.b32.xlu0 %v1619_v52, %s2779_s22 }
 0x9d7   : > { %1670 = vrot.lane.b32.xlu1 %v2506_v46, %s2784_s19 }
 0x9d8   : > { %1656 = vrot.lane.b32.xlu0 %v1619_v52, %s2762_s17 }
 0x9db   : > { %1738 = vrot.lane.b32.xlu1 %v2509_v51, %s2783_s26 }
 0x9dc   : > { %1736 = vrot.lane.b32.xlu0 %v1619_v52, %s2783_s26 }
 0x9df   : > { %1674 = vrot.lane.b32.xlu1 %v2509_v51, %s2784_s19 }
 0x9e0   : > { %1672 = vrot.lane.b32.xlu0 %v1619_v52, %s2784_s19 }
 0x9e3   : > { %1750 = vrot.lane.b32.xlu1 %v2506_v46, %s2773_s25 }
 0x9e4   : > { %1748 = vrot.lane.b32.xlu0 %v1609_v50, %s2773_s25 }
 0x9e7   : > { %1754 = vrot.lane.b32.xlu1 %v2509_v51, %s2773_s25 }
 0x9e8   : > { %1752 = vrot.lane.b32.xlu0 %v1619_v52, %s2773_s25 }
 0x9eb   : > { %1839 = vperm.xlu1 %2746, %v1825_v54  }
 0x9ec   : > { %1834 = vperm.xlu0 %2735, %v1824_v56  }
 0x9ef   : > { %1849 = vperm.xlu1 %2746, %v1827_v57  }
 0x9f0   : > { %1844 = vperm.xlu0 %2735, %v1826_v58  }
 0x9f3   : > { %1859 = vperm.xlu1 %2746, %v1829_v59  }
 0x9f4   : > { %1854 = vperm.xlu0 %2735, %v1828_v61  }
 0x9f7   : > { %1869 = vperm.xlu1 %2746, %v1831_v62  }
 0x9f8   : > { %1864 = vperm.xlu0 %2735, %v1830_v63  }
 0xa1d   : > { %v1687_v0 = vpop.permute.xlu1 %1686 }
 0xa1e   : > { %1697 = vst.msk [vmem:[#allocation5 + $0x88] sm:$0xff] %vm1380_vm3, %v1687_v0  ;;  %v1685_v1 = vpop.permute.xlu0 %1684 }
 0xa1f   : > { %1696 = vst.msk [vmem:[#allocation5 + $0x80] sm:$0xff] %vm1380_vm3, %v1685_v1 }
 0xa21   : > { %v1703_v2 = vpop.permute.xlu1 %1702 }
 0xa22   : > { %1713 = vst.msk [vmem:[#allocation5 + $0xa8] sm:$0xff] %vm1380_vm3, %v1703_v2  ;;  %v1701_v3 = vpop.permute.xlu0 %1700 }
 0xa23   : > { %1712 = vst.msk [vmem:[#allocation5 + $0xa0] sm:$0xff] %vm1380_vm3, %v1701_v3 }
 0xa25   : > { %v1639_v41 = vpop.permute.xlu1 %1638  ;;  %v1805_v5 = vld [vmem:[#allocation5 + $0x88] sm:$0xff] }
 0xa26   : > { %1649 = vst.msk [vmem:[#allocation5 + $0x28] sm:$0xff] %vm1380_vm3, %v1639_v41  ;;  %v1637_v60 = vpop.permute.xlu0 %1636  ;;  %v1804_v47 = vld [vmem:[#allocation5 + $0x80] sm:$0xff] }
 0xa27   : > { %1648 = vst.msk [vmem:[#allocation5 + $0x20] sm:$0xff] %vm1380_vm3, %v1637_v60  ;;  %v2660_v49 = vpack.c.bf16 %v1805_v5, %v1804_v47 }
 0xa29   : > { %v1719_v45 = vpop.permute.xlu1 %1718  ;;  %2661 = vmatprep.subr.bf16.mxu0 %v2660_v49  ;;  %v1809_v23 = vld [vmem:[#allocation5 + $0xa8] sm:$0xff] }
 0xa2a   : > { %1729 = vst.msk [vmem:[#allocation5 + $0xc8] sm:$0xff] %vm1380_vm3, %v1719_v45  ;;  %2663 = vmatpush3.bf16.msra.mxu0 %v2662_v8  ;;  %v1717_v48 = vpop.permute.xlu0 %1716  ;;  %v1808_v22 = vld [vmem:[#allocation5 + $0xa0] sm:$0xff] }
 0xa2b   : > { %1728 = vst.msk [vmem:[#allocation5 + $0xc0] sm:$0xff] %vm1380_vm3, %v1717_v48  ;;  %v2668_v27 = vpack.c.bf16 %v1809_v23, %v1808_v22  ;;  %v1774_v22 = vld [vmem:[%s3471_s7 + $0x50] sm:$0xff]  ;;  %v1772_v23 = vld [vmem:[%s3471_s7 + $0x40] sm:$0xff] }
 0xa2d   : > { %v1655_v9 = vpop.permute.xlu1 %1654  ;;  %v1793_v29 = vld [vmem:[#allocation5 + $0x28] sm:$0xff] }
 0xa2e   : > { %1665 = vst.msk [vmem:[#allocation5 + $0x48] sm:$0xff] %vm1380_vm3, %v1655_v9  ;;  %v1653_v10 = vpop.permute.xlu0 %1652  ;;  %v1792_v28 = vld [vmem:[#allocation5 + $0x20] sm:$0xff] }
 0xa2f   : > { %1664 = vst.msk [vmem:[#allocation5 + $0x40] sm:$0xff] %vm1380_vm3, %v1653_v10  ;;  %v2670_v32 = vpack.c.bf16 %v1793_v29, %v1792_v28  ;;  %v1776_v28 = vld [vmem:[%s3471_s7 + $0x60] sm:$0xff] }
 0xa30   : > { %v1780_v29 = vld [vmem:[%s3471_s7 + $0x80] sm:$0xff] }
 0xa31   : > { %v1735_v31 = vpop.permute.xlu1 %1734  ;;  %v1813_v40 = vld [vmem:[#allocation5 + $0xc8] sm:$0xff] }
 0xa32   : > { %1745 = vst.msk [vmem:[#allocation5 + $0xe8] sm:$0xff] %vm1380_vm3, %v1735_v31  ;;  %v1733_v11 = vpop.permute.xlu0 %1732  ;;  %v1812_v39 = vld [vmem:[#allocation5 + $0xc0] sm:$0xff]  ;;  %v1764_v31 = vld [vmem:[%s3471_s7] sm:$0xff] }
 0xa33   : > { %1744 = vst.msk [vmem:[#allocation5 + $0xe0] sm:$0xff] %vm1380_vm3, %v1733_v11  ;;  %v2676_v46 = vpack.c.bf16 %v1813_v40, %v1812_v39 }
 0xa35   : > { %v1691_v12 = vpop.permute.xlu1 %1690  ;;  %v1797_v51 = vld [vmem:[#allocation5 + $0x48] sm:$0xff] }
 0xa36   : > { %1699 = vst.msk [vmem:[#allocation5 + $0x98] sm:$0xff] %vm1380_vm3, %v1691_v12  ;;  %v1689_v13 = vpop.permute.xlu0 %1688  ;;  %v1796_v50 = vld [vmem:[#allocation5 + $0x40] sm:$0xff] }
 0xa37   : > { %1698 = vst.msk [vmem:[#allocation5 + $0x90] sm:$0xff] %vm1380_vm3, %v1689_v13  ;;  %v2678_v56 = vpack.c.bf16 %v1797_v51, %v1796_v50  ;;  %v1768_v13 = vld [vmem:[%s3471_s7 + $0x20] sm:$0xff] }
 0xa39   : > { %v1707_v14 = vpop.permute.xlu1 %1706  ;;  %v1817_v61 = vld [vmem:[#allocation5 + $0xe8] sm:$0xff] }
 0xa3a   : > { %1715 = vst.msk [vmem:[#allocation5 + $0xb8] sm:$0xff] %vm1380_vm3, %v1707_v14  ;;  %v1669_v15 = vpop.permute.xlu0 %1668  ;;  %v1816_v59 = vld [vmem:[#allocation5 + $0xe0] sm:$0xff] }
 0xa3b   : > { %1680 = vst.msk [vmem:[#allocation5 + $0x60] sm:$0xff] %vm1380_vm3, %v1669_v15  ;;  %v2684_v2 = vpack.c.bf16 %v1817_v61, %v1816_v59  ;;  %v1767_v15 = vld [vmem:[%s3471_s7 + $0x18] sm:$0xff] }
 0xa3d   : > { %v1643_v16 = vpop.permute.xlu1 %1642  ;;  %v1807_v17 = vld [vmem:[#allocation5 + $0x98] sm:$0xff] }
 0xa3e   : > { %1651 = vst.msk [vmem:[#allocation5 + $0x38] sm:$0xff] %vm1380_vm3, %v1643_v16  ;;  %v1705_v20 = vpop.permute.xlu0 %1704  ;;  %v1806_v21 = vld [vmem:[#allocation5 + $0x90] sm:$0xff] }
 0xa3f   : > { %1714 = vst.msk [vmem:[#allocation5 + $0xb0] sm:$0xff] %vm1380_vm3, %v1705_v20  ;;  %v2664_v24 = vpack.c.bf16 %v1807_v17, %v1806_v21  ;;  %v1770_v20 = vld [vmem:[%s3471_s7 + $0x30] sm:$0xff]  ;;  %v1769_v21 = vld [vmem:[%s3471_s7 + $0x28] sm:$0xff] }
 0xa41   : > { %v1723_v26 = vpop.permute.xlu1 %1722  ;;  %2665 = vmatprep.subr.bf16.mxu0 %v2664_v24  ;;  %v1811_v36 = vld [vmem:[#allocation5 + $0xb8] sm:$0xff]  ;;  %v1773_v24 = vld [vmem:[%s3471_s7 + $0x48] sm:$0xff] }
 0xa42   : > { %1731 = vst.msk [vmem:[#allocation5 + $0xd8] sm:$0xff] %vm1380_vm3, %v1723_v26  ;;  %2667 = vmatpush3.bf16.msra.mxu0 %v2666_v25  ;;  %v1641_v30 = vpop.permute.xlu0 %1640  ;;  %v1800_v7 = vld [vmem:[#allocation5 + $0x60] sm:$0xff]  ;;  %v1775_v25 = vld [vmem:[%s3471_s7 + $0x58] sm:$0xff] }
 0xa43   : > { %1650 = vst.msk [vmem:[#allocation5 + $0x30] sm:$0xff] %vm1380_vm3, %v1641_v30  ;;  %2669 = vmatprep.subr.bf16.mxu0 %v2668_v27  ;;  %v1777_v26 = vld [vmem:[%s3471_s7 + $0x68] sm:$0xff]  ;;  %v1778_v27 = vld [vmem:[%s3471_s7 + $0x70] sm:$0xff] }
 0xa44   : > { %v1781_v30 = vld [vmem:[%s3471_s7 + $0x88] sm:$0xff] }
 0xa45   : > { %v1659_v33 = vpop.permute.xlu1 %1658  ;;  %v1795_v43 = vld [vmem:[#allocation5 + $0x38] sm:$0xff] }
 0xa46   : > { %1667 = vst.msk [vmem:[#allocation5 + $0x58] sm:$0xff] %vm1380_vm3, %v1659_v33  ;;  %2671 = vmatpush3.bf16.msra.mxu0 %v2670_v32  ;;  %v1721_v34 = vpop.permute.xlu0 %1720  ;;  %v1810_v35 = vld [vmem:[#allocation5 + $0xb0] sm:$0xff]  ;;  %v1784_v32 = vld [vmem:[%s3471_s7 + $0xa0] sm:$0xff] }
 0xa47   : > { %1730 = vst.msk [vmem:[#allocation5 + $0xd0] sm:$0xff] %vm1380_vm3, %v1721_v34  ;;  %v2672_v37 = vpack.c.bf16 %v1811_v36, %v1810_v35  ;;  %v1779_v33 = vld [vmem:[%s3471_s7 + $0x78] sm:$0xff]  ;;  %v1782_v36 = vld [vmem:[%s3471_s7 + $0x90] sm:$0xff] }
 0xa48   : > { %v1783_v34 = vld [vmem:[%s3471_s7 + $0x98] sm:$0xff] }
 0xa49   : > { %v1671_v38 = vpop.permute.xlu1 %1670  ;;  %2673 = vmatprep.subr.bf16.mxu0 %v2672_v37  ;;  %v1815_v55 = vld [vmem:[#allocation5 + $0xd8] sm:$0xff]  ;;  %v1787_v35 = vld [vmem:[%s3471_s7 + $0xb8] sm:$0xff]  ;;  %v1786_v37 = vld [vmem:[%s3471_s7 + $0xb0] sm:$0xff] }
 0xa4a   : > { %1681 = vst.msk [vmem:[#allocation5 + $0x68] sm:$0xff] %vm1380_vm3, %v1671_v38  ;;  %v1657_v42 = vpop.permute.xlu0 %1656  ;;  %v1794_v4 = vld [vmem:[#allocation5 + $0x30] sm:$0xff]  ;;  %v1785_v38 = vld [vmem:[%s3471_s7 + $0xa8] sm:$0xff] }
 0xa4b   : > { %1666 = vst.msk [vmem:[#allocation5 + $0x50] sm:$0xff] %vm1380_vm3, %v1657_v42  ;;  %v2674_v44 = vpack.c.bf16 %v1795_v43, %v1794_v4 }
 0xa4d   : > { %v1739_v52 = vpop.permute.xlu1 %1738  ;;  %2675 = vmatpush3.bf16.msra.mxu0 %v2674_v44  ;;  %v1799_v0 = vld [vmem:[#allocation5 + $0x58] sm:$0xff] }
 0xa4e   : > { %1747 = vst.msk [vmem:[#allocation5 + $0xf8] sm:$0xff] %vm1380_vm3, %v1739_v52  ;;  %2677 = vmatprep.subr.bf16.mxu0 %v2676_v46  ;;  %v1737_v53 = vpop.permute.xlu0 %1736  ;;  %v1814_v54 = vld [vmem:[#allocation5 + $0xd0] sm:$0xff] }
 0xa4f   : > { %1746 = vst.msk [vmem:[#allocation5 + $0xf0] sm:$0xff] %vm1380_vm3, %v1737_v53  ;;  %v2680_v57 = vpack.c.bf16 %v1815_v55, %v1814_v54 }
 0xa51   : > { %v1675_v58 = vpop.permute.xlu1 %1674  ;;  %2679 = vmatpush3.bf16.msra.mxu0 %v2678_v56  ;;  %v1801_v3 = vld [vmem:[#allocation5 + $0x68] sm:$0xff] }
 0xa52   : > { %1683 = vst.msk [vmem:[#allocation5 + $0x78] sm:$0xff] %vm1380_vm3, %v1675_v58  ;;  %2681 = vmatprep.subr.bf16.mxu0 %v2680_v57  ;;  %v1673_v62 = vpop.permute.xlu0 %1672  ;;  %v1798_v63 = vld [vmem:[#allocation5 + $0x50] sm:$0xff]  ;;  %v2686_v47 = vpack.c.bf16 %v1801_v3, %v1800_v7 }
 0xa53   : > { %1682 = vst.msk [vmem:[#allocation5 + $0x70] sm:$0xff] %vm1380_vm3, %v1673_v62  ;;  %v2682_v1 = vpack.c.bf16 %v1799_v0, %v1798_v63  ;;  %v2116_v62 = vld [vmem:[%s3476_s12 + $0x8] sm:$0xff] }
 0xa55   : > { %v1751_v41 = vpop.permute.xlu1 %1750  ;;  %2683 = vmatpush3.bf16.msra.mxu0 %v2682_v1  ;;  %v1819_v5 = vld [vmem:[#allocation5 + $0xf8] sm:$0xff] }
 0xa56   : > { %1761 = vst.msk [vmem:[#allocation5 + $0x108] sm:$0xff] %vm1380_vm3, %v1751_v41  ;;  %2685 = vmatprep.subr.bf16.mxu0 %v2684_v2  ;;  %v1749_v6 = vpop.permute.xlu0 %1748  ;;  %v1818_v60 = vld [vmem:[#allocation5 + $0xf0] sm:$0xff]  ;;  %v2115_v2 = vld [vmem:[%s3476_s12] sm:$0xff] }
 0xa57   : > { %1760 = vst.msk [vmem:[#allocation5 + $0x100] sm:$0xff] %vm1380_vm3, %v1749_v6  ;;  %v2688_v49 = vpack.c.bf16 %v1819_v5, %v1818_v60 }
 0xa59   : > { %v1755_v8 = vpop.permute.xlu1 %1754  ;;  %2687 = vmatpush3.bf16.msra.mxu0 %v2686_v47  ;;  %v1803_v45 = vld [vmem:[#allocation5 + $0x78] sm:$0xff] }
 0xa5a   : > { %1763 = vst.msk [vmem:[#allocation5 + $0x118] sm:$0xff] %vm1380_vm3, %v1755_v8  ;;  %2689 = vmatprep.subr.bf16.mxu0 %v2688_v49  ;;  %v1753_v48 = vpop.permute.xlu0 %1752  ;;  %v1802_v9 = vld [vmem:[#allocation5 + $0x70] sm:$0xff] }
 0xa5b   : > { %1762 = vst.msk [vmem:[#allocation5 + $0x110] sm:$0xff] %vm1380_vm3, %v1753_v48  ;;  %v2690_v10 = vpack.c.bf16 %v1803_v45, %v1802_v9 }
 0xa5d   : > { %2691 = vmatpush3.bf16.msra.mxu0 %v2690_v10  ;;  %v1821_v11 = vld [vmem:[#allocation5 + $0x108] sm:$0xff] }
 0xa5e   : > { %v1820_v12 = vld [vmem:[#allocation5 + $0x100] sm:$0xff]  ;;  %v2117_v10 = vld [vmem:[%s3476_s12 + $0x10] sm:$0xff] }
 0xa5f   : > { %v2692_v14 = vpack.c.bf16 %v1821_v11, %v1820_v12 }
 0xa60   : > { %1962 = vmatmul.mubr.f32.vlgmr.msra.gmra.mrb[4].mxu0 %v1764_v31 }
 0xa61   : > { %2693 = vmatprep.subr.bf16.mxu1 %v2692_v14  ;;  %1966 = vmatprep.mubr.f32.mxu0 %v1768_v13  ;;  %v1823_v16 = vld [vmem:[#allocation5 + $0x118] sm:$0xff] }
 0xa62   : > { %2695 = vmatpush3.bf16.msra.mxu1 %v2692_v14  ;;  %v1822_v17 = vld [vmem:[#allocation5 + $0x110] sm:$0xff] }
 0xa63   : > { %v2696_v19 = vpack.c.bf16 %v1823_v16, %v1822_v17 }
 0xa64   : > { %1967 = vmatmul.mubr.f32.gmra.mrb[6].mxu0 %v1767_v15 }
 0xa65   : > { %2697 = vmatprep.subr.bf16.mxu1 %v2696_v19  ;;  %1971 = vmatprep.mubr.f32.mxu0 %v1771_v18  ;;  %v2118_v18 = vld [vmem:[%s3476_s12 + $0x18] sm:$0xff] }
 0xa66   : > { %2699 = vmatpush3.bf16.msra.mxu1 %v2696_v19 }
 0xa68   : > { %1972 = vmatmul.mubr.f32.gmra.mrb[8].mxu0 %v1770_v20 }
 0xa69   : > { %2519 = vmatmul.mubr.msk.f32.vlgmr.msra.gmra.mrb[20].mxu1 %vm1872_vm7, %v1769_v21  ;;  %1976 = vmatprep.mubr.f32.mxu0 %v1774_v22 }
 0xa6a   : > { %2521 = vmatprep.mubr.msk.f32.mxu1 %vm1872_vm7, %v1772_v23  ;;  %v1840_v50 = vpop.permute.xlu1 %1839 }
 0xa6b   : > { %v1835_v43 = vpop.permute.xlu0 %1834 }
 0xa6c   : > { %1977 = vmatmul.mubr.f32.gmra.mrb[10].mxu0 %v1773_v24 }
 0xa6d   : > { %2522 = vmatmul.mubr.msk.f32.gmra.mrb[22].mxu1 %vm1872_vm7, %v1775_v25  ;;  %1981 = vmatprep.mubr.f32.mxu0 %v1777_v26 }
 0xa6e   : > { %2524 = vmatprep.mubr.msk.f32.mxu1 %vm1872_vm7, %v1778_v27  ;;  %v1850_v47 = vpop.permute.xlu1 %1849 }
 0xa6f   : > { %v1845_v59 = vpop.permute.xlu0 %1844 }
 0xa70   : > { %1982 = vmatmul.mubr.f32.gmra.mrb[12].mxu0 %v1776_v28 }
 0xa71   : > { %1986 = vmatprep.mubr.f32.mxu0 %v1780_v29  ;;  %2525 = vmatmul.mubr.msk.f32.gmra.mrb[24].mxu1 %vm1872_vm7, %v1781_v30 }
 0xa72   : > { %2527 = vmatprep.mubr.msk.f32.mxu1 %vm1872_vm7, %v1784_v32  ;;  %v1860_v30 = vpop.permute.xlu1 %1859  ;;  %v2119_v32 = vld [vmem:[%s3476_s12 + $0x20] sm:$0xff] }
 0xa73   : > { %v1855_v17 = vpop.permute.xlu0 %1854 }
 0xa74   : > { %1987 = vmatmul.mubr.f32.gmra.mrb[14].mxu0 %v1779_v33 }
 0xa75   : > { %1991 = vmatprep.mubr.f32.mxu0 %v1783_v34  ;;  %2528 = vmatmul.mubr.msk.f32.gmra.mrb[26].mxu1 %vm1872_vm7, %v1787_v35 }
 0xa78   : > { %1992 = vmatmul.mubr.f32.gmra.mrb[16].mxu0 %v1782_v36 }
 0xa79   : > { %1996 = vmatprep.mubr.f32.mxu0 %v1786_v37 }
 0xa7c   : > { %1997 = vmatmul.mubr.f32.gmra.mrb[18].mxu0 %v1785_v38 }
 0xb33   : > { %v2388_v39 = vpop.f32.mrb[4].mxu0 }
 0xb34   : > { %v2389_v40 = vpop.f32.mrb[5].mxu0 }
 0xb35   : > { %v2390_v42 = vadd.f32 %v2389_v40, %v2388_v39 }
 0xb37   : > { %v2391_v4 = vpop.f32.mrb[6].mxu0  ;;  %v1964_v55 = vadd.f32 %v2390_v42, %v1835_v43  ;;  %v1865_v42 = vpop.permute.xlu0 %1864 }
 0xb38   : > { %v2392_v44 = vpop.f32.mrb[7].mxu0 }
 0xb39   : > { %v2393_v46 = vadd.f32 %v2392_v44, %v2391_v4  ;;  %v2120_v4 = vld [vmem:[%s3476_s12 + $0x28] sm:$0xff] }
 0xb3b   : > { %v2394_v51 = vpop.f32.mrb[8].mxu0  ;;  %v1969_v52 = vadd.f32 %v2393_v46, %v1840_v50 }
 0xb3c   : > { %v2395_v53 = vpop.f32.mrb[9].mxu0  ;;  %v2520_v54 = vpop.f32.mrb[20].mxu1 }
 0xb3d   : > { %v2396_v56 = vadd.f32 %v2395_v53, %v2394_v51  ;;  %v2074_v57 = vadd.f32 %v2520_v54, %v1969_v52  ;;  %v2068_v58 = vpop.f32.mrb[21].mxu1 }
 0xb3e   : > { %v2069_v61 = vadd.f32 %v2068_v58, %v1964_v55  ;;  %v1870_v55 = vpop.permute.xlu1 %1869  ;;  %v2169_v58 = vld [vmem:[%s527_s0] sm:$0x1] }
 0xb3f   : > { %v2108_v63 = vmax.f32 %v2074_v57, 0.0  ;;  %v2397_v0 = vpop.f32.mrb[10].mxu0  ;;  %v1974_v1 = vadd.f32 %v2396_v56, %v1845_v59  ;;  %v2121_v56 = vld [vmem:[%s3476_s12 + $0x30] sm:$0xff]  ;;  %v2168_v57 = vld [vmem:[%s3477_s13] sm:$0x1] }
 0xb40   : > { %v2107_v3 = vmax.f32 %v2069_v61, 0.0  ;;  %v2398_v41 = vpop.f32.mrb[11].mxu0  ;;  %v2523_v5 = vpop.f32.mrb[22].mxu1 }
 0xb41   : > { %v2399_v6 = vadd.f32 %v2398_v41, %v2397_v0  ;;  %v2078_v7 = vpop.f32.mrb[23].mxu1  ;;  %v2124_v60 = vmul.f32 %v2116_v62, %v2108_v63 }
 0xb42   : > { %v2079_v49 = vadd.f32 %v2078_v7, %v1974_v1  ;;  %v2123_v8 = vmul.f32 %v2115_v2, %v2107_v3  ;;  %v2170_v1 = vmul.f32 %v2169_v58, %v2168_v57  ;;  %v2122_v2 = vld [vmem:[%s3476_s12 + $0x38] sm:$0xff] }
 0xb43   : > { %v1979_v45 = vadd.f32 %v2399_v6, %v1850_v47  ;;  %v2400_v48 = vpop.f32.mrb[12].mxu0  ;;  %v2134_v9 = vsel %vm1380_vm3, %v2124_v60, 0.0 }
 0xb44   : > { %v2109_v31 = vmax.f32 %v2079_v49, 0.0  ;;  %v2401_v11 = vpop.f32.mrb[13].mxu0  ;;  %2135 = vadd.xlane.f32.xlu1 %v2134_v9  ;;  %v2131_v12 = vsel %vm1380_vm3, %v2123_v8, 0.0  ;;  %v2526_v13 = vpop.f32.mrb[24].mxu1  ;;  %v2172_v6 = vsel %vm2171_vm8, %v2170_v1, 0.0 }
 0xb45   : > { %v2084_v14 = vadd.f32 %v2523_v5, %v1979_v45  ;;  %v2402_v15 = vadd.f32 %v2401_v11, %v2400_v48  ;;  %2132 = vadd.xlane.f32.xlu0 %v2131_v12  ;;  %v2088_v16 = vpop.f32.mrb[25].mxu1 }
 0xb46   : > { %v2125_v19 = vmul.f32 %v2117_v10, %v2109_v31 }
 0xb47   : > { %v2110_v20 = vmax.f32 %v2084_v14, 0.0  ;;  %v2403_v21 = vpop.f32.mrb[14].mxu0  ;;  %v1984_v22 = vadd.f32 %v2402_v15, %v1855_v17 }
 0xb48   : > { %v2404_v23 = vpop.f32.mrb[15].mxu0  ;;  %v2137_v24 = vsel %vm1380_vm3, %v2125_v19, 0.0  ;;  %v2529_v25 = vpop.f32.mrb[26].mxu1 }
 0xb49   : > { %v2126_v26 = vmul.f32 %v2118_v18, %v2110_v20  ;;  %v2405_v27 = vadd.f32 %v2404_v23, %v2403_v21  ;;  %v2089_v28 = vadd.f32 %v2088_v16, %v1984_v22  ;;  %2138 = vadd.xlane.f32.xlu0 %v2137_v24  ;;  %v2098_v29 = vpop.f32.mrb[27].mxu1  ;;  %v2176_v24 = vld [vmem:[#allocation6] sm:$0x1] }
 0xb4b   : > { %v1989_v33 = vadd.f32 %v2405_v27, %v1860_v30  ;;  %v2111_v34 = vmax.f32 %v2089_v28, 0.0  ;;  %v2406_v35 = vpop.f32.mrb[16].mxu0  ;;  %v2140_v36 = vsel %vm1380_vm3, %v2126_v26, 0.0 }
 0xb4c   : > { %v2407_v37 = vpop.f32.mrb[17].mxu0 }
 0xb4d   : > { %v2094_v38 = vadd.f32 %v2526_v13, %v1989_v33  ;;  %v2127_v39 = vmul.f32 %v2119_v32, %v2111_v34  ;;  %v2408_v40 = vadd.f32 %v2407_v37, %v2406_v35  ;;  %2141 = vadd.xlane.f32.xlu0 %v2140_v36 }
 0xb4f   : > { %v2112_v43 = vmax.f32 %v2094_v38, 0.0  ;;  %v2409_v44 = vpop.f32.mrb[18].mxu0  ;;  %v1994_v46 = vadd.f32 %v2408_v40, %v1865_v42  ;;  %v2143_v50 = vsel %vm1380_vm3, %v2127_v39, 0.0 }
 0xb50   : > { %v2410_v51 = vpop.f32.mrb[19].mxu0  ;;  %2144 = vadd.xlane.f32.xlu1 %v2143_v50 }
 0xb51   : > { %v2411_v52 = vadd.f32 %v2410_v51, %v2409_v44  ;;  %v2099_v53 = vadd.f32 %v2098_v29, %v1994_v46  ;;  %v2128_v54 = vmul.f32 %v2120_v4, %v2112_v43 }
 0xb53   : > { %v1999_v59 = vadd.f32 %v2411_v52, %v1870_v55  ;;  %v2113_v61 = vmax.f32 %v2099_v53, 0.0  ;;  %v2146_v62 = vsel %vm1380_vm3, %v2128_v54, 0.0 }
 0xb54   : > { %2147 = vadd.xlane.f32.xlu0 %v2146_v62 }
 0xb55   : > { %v2104_v63 = vadd.f32 %v2529_v25, %v1999_v59  ;;  %v2129_v0 = vmul.f32 %v2121_v56, %v2113_v61 }
 0xb57   : > { %v2114_v3 = vmax.f32 %v2104_v63, 0.0  ;;  %v2149_v41 = vsel %vm1380_vm3, %v2129_v0, 0.0 }
 0xb58   : > { %2150 = vadd.xlane.f32.xlu1 %v2149_v41 }
 0xb59   : > { %v2130_v5 = vmul.f32 %v2122_v2, %v2114_v3 }
 0xb5b   : > { %v2152_v7 = vsel %vm1380_vm3, %v2130_v5, 0.0 }
 0xb5c   : > { %2153 = vadd.xlane.f32.xlu0 %v2152_v7  ;;  %2173 = vadd.xlane.f32.xlu1 %v2172_v6 }
 0xbd1   : > { %v2136_v49 = vpop.xlane.xlu1 %2135 }
 0xbd2   : > { %v2133_v60 = vpop.xlane.xlu0 %2132 }
 0xbd3   : > { %v2155_v8 = vadd.f32 %v2136_v49, %v2133_v60 }
 0xbd6   : > { %v2139_v47 = vpop.xlane.xlu0 %2138 }
 0xbd7   : > { %v2156_v48 = vadd.f32 %v2155_v8, %v2139_v47 }
 0xbda   : > { %v2142_v45 = vpop.xlane.xlu0 %2141 }
 0xbdb   : > { %v2157_v9 = vadd.f32 %v2156_v48, %v2142_v45 }
 0xbdd   : > { %v2145_v10 = vpop.xlane.xlu1 %2144 }
 0xbde   : > { %v2158_v11 = vadd.f32 %v2157_v9, %v2145_v10 }
 0xbe1   : > { %v2148_v31 = vpop.xlane.xlu0 %2147 }
 0xbe2   : > { %v2159_v13 = vadd.f32 %v2158_v11, %v2148_v31 }
 0xbe5   : > { %v2151_v12 = vpop.xlane.xlu1 %2150 }
 0xbe6   : > { %v2160_v14 = vadd.f32 %v2159_v13, %v2151_v12 }
 0xbe9   : > { %v2154_v15 = vpop.xlane.xlu0 %2153  ;;  %v2174_v22 = vpop.xlane.xlu1 %2173 }
 0xbea   : > { %v2161_v16 = vadd.f32 %v2160_v14, %v2154_v15 }
 0xbec   : > { %v2162_v17 = vrot.slane %v2161_v16, 4 }
 0xbee   : > { %v2163_v18 = vadd.f32 %v2162_v17, %v2161_v16 }
 0xbf0   : > { %v2164_v19 = vrot.slane %v2163_v18, 2 }
 0xbf2   : > { %v2165_v20 = vadd.f32 %v2164_v19, %v2163_v18 }
 0xbf4   : > { %v2166_v21 = vrot.slane %v2165_v20, 1 }
 0xbf6   : > { %v2167_v23 = vadd.f32 %v2166_v21, %v2165_v20 }
 0xbf8   : > { %v2175_v25 = vadd.f32 %v2174_v22, %v2167_v23 }
 0xbfa   : > { %v2177_v26 = vadd.f32 %v2176_v24, %v2175_v25 }
 0xbfc   : > { %v2178_v27 = vsub.f32 0.0, %v2177_v26 }
 0xbfe   : > { %v2179_v28 = vmul.f32 1.442695, %v2178_v27 }
 0xc00   : > { %2747 = vpow2.f32 %v2179_v28 }
 0xc0a   : > { %v2748_v29 = vpop.eup %2747 }
 0xc0b   : > { %v2181_v30 = vadd.f32 1.0, %v2748_v29 }
 0xc0d   : > { %2749 = vrcp.f32 %v2181_v30 }
 0xc17   : > { %v2750_v32 = vpop.eup %2749 }
 0xc18   : > { %2184 = vst.msk [vmem:[%s530_s20] sm:$0x1] %vm2183_vm9, %v2750_v32 }
 0xc19 PF: > { %s28_s23 = sadd.s32 1, %s2757_s23  }
 0xc1a   : > { %p25_p4 = scmp.ge.s32.totalorder %s28_s23, 4  }
 0xc1c   :  { %27 = sbr.rel (!%p25_p4) target bundleno = 3 (0x3), region = 125 }

</bundles_post_ra>
